<compile_context>
chip_gen: v7x
topology: tpu7x:2x2x1
jax: 0.10.0
libtpu: 0.0.40
codegen_flags: <defaults>
</compile_context>

<pallas_src>
import jax
import jax.numpy as jnp
from jax.experimental import pallas as pl
from jax.experimental.pallas import tpu as pltpu

IN_DIM = 768                 # in_dimension from the module
HID_DIM = IN_DIM // 2        # round(768 / 2) = 384
OUT_DIM = 4                  # len(np.unique(y_no_hosp)) — synthetic small class count
MAX_TB = 1024                # VMEM-budget-derived cap on batch rows per grid step


def _pick_tb(batch, max_tb=MAX_TB):
    """Batch tile: multiple of 8 sublanes, capped by VMEM budget; for small
    batches pick ~ceil(B/2) so the grid has >= 2 steps (dual-TC v7x)."""
    if batch <= 8:
        return 8
    half = -(-batch // 2)                      # ceil(B / 2)
    return min(max_tb, ((half + 7) // 8) * 8)  # round up to sublane multiple


def prepare_params(w1, b1, w2, b2):
    """One-time parameter prep (hoisted out of the per-call path):
    bf16 weight storage, 128-lane zero padding of W2/b2 for a dense MXU tile."""
    hid = w1.shape[1]
    out_dim = w2.shape[1]
    out_pad = pl.cdiv(out_dim, 128) * 128
    w1b = w1.astype(jnp.bfloat16)
    w2b = jnp.zeros((hid, out_pad), jnp.bfloat16).at[:, :out_dim].set(
        w2.astype(jnp.bfloat16))
    b1f = b1.reshape(1, hid).astype(jnp.float32)
    b2f = jnp.zeros((1, out_pad), jnp.float32).at[:, :out_dim].set(
        b2.reshape(1, out_dim).astype(jnp.float32))
    return w1b, b1f, w2b, b2f


def _make_kernel(out_dim):
    def classifier_kernel(x_ref, w1_ref, b1_ref, w2_ref, b2_ref, o_ref):
        # x arrives f32 straight from HBM; cast to bf16 on the VPU right
        # before the MXU (no separate wrapper-side cast pass over x).
        xb = x_ref[...].astype(jnp.bfloat16)
        # Layer 1: bf16 operands, f32 accumulation on the MXU.
        h = jnp.dot(xb, w1_ref[...], preferred_element_type=jnp.float32)
        h = jnp.maximum(h + b1_ref[...], 0.0)        # f32 bias + ReLU (VPU)
        # Dropout(p=0.5): eval mode -> identity (see TODO at top).
        # Layer 2: bf16 operands against the 128-lane-padded W2, f32 acc.
        out = jnp.dot(h.astype(jnp.bfloat16), w2_ref[...],
                      preferred_element_type=jnp.float32)
        out = out + b2_ref[...]
        # Store only the real class columns (narrow HBM writeback).
        o_ref[...] = out[:, :out_dim]
    return classifier_kernel


def classifier_forward(x, w1b, b1f, w2b, b2f, out_dim, *, max_tb=MAX_TB):
    """x: (B, 768) f32 (or bf16); prepped params from prepare_params();
    out_dim: static true class count.  Returns (B, out_dim) f32 logits."""
    batch, in_dim = x.shape
    hid, out_pad = w2b.shape
    tb = _pick_tb(batch, max_tb)
    grid = pl.cdiv(batch, tb)

    return pl.pallas_call(
        _make_kernel(out_dim),
        out_shape=jax.ShapeDtypeStruct((batch, out_dim), jnp.float32),
        grid_spec=pl.GridSpec(
            grid=(grid,),
            in_specs=[
                pl.BlockSpec((tb, in_dim), lambda i: (i, 0)),       # x tile
                pl.BlockSpec((in_dim, hid), lambda i: (0, 0)),      # W1 resident
                pl.BlockSpec((1, hid), lambda i: (0, 0)),           # b1 resident
                pl.BlockSpec((hid, out_pad), lambda i: (0, 0)),     # W2 resident
                pl.BlockSpec((1, out_pad), lambda i: (0, 0)),       # b2 resident
            ],
            out_specs=pl.BlockSpec((tb, out_dim), lambda i: (i, 0)),
        ),
        compiler_params=pltpu.CompilerParams(
            dimension_semantics=("parallel",),
            vmem_limit_bytes=32 * 1024 * 1024,
        ),
    )(x, w1b, b1f, w2b, b2f)


def reference_forward(x, w1, b1, w2, b2):
    # Mirrors the kernel's bf16-operand / f32-accumulate numerics.
    xb = x.astype(jnp.bfloat16)
    w1b = w1.astype(jnp.bfloat16)
    w2b = w2.astype(jnp.bfloat16)
    h = jnp.dot(xb, w1b, preferred_element_type=jnp.float32) + b1
    h = jnp.maximum(h, 0.0)
    return jnp.dot(h.astype(jnp.bfloat16), w2b,
                   preferred_element_type=jnp.float32) + b2


if __name__ == "__main__":
    key = jax.random.PRNGKey(0)
    kx, k1, k2, k3, k4 = jax.random.split(key, 5)

    B = 200  # non-multiple of the tile -> exercises the ragged last grid step

    # Deterministic parameter init (PyTorch Linear default: U(-1/sqrt(fan_in), +)).
    bound1 = 1.0 / (IN_DIM ** 0.5)
    bound2 = 1.0 / (HID_DIM ** 0.5)
    w1 = jax.random.uniform(k1, (IN_DIM, HID_DIM), jnp.float32, -bound1, bound1)
    b1 = jax.random.uniform(k2, (1, HID_DIM), jnp.float32, -bound1, bound1)
    w2 = jax.random.uniform(k3, (HID_DIM, OUT_DIM), jnp.float32, -bound2, bound2)
    b2 = jax.random.uniform(k4, (1, OUT_DIM), jnp.float32, -bound2, bound2)

    x = jax.random.normal(kx, (B, IN_DIM), jnp.float32)

    # One-time parameter prep (hoisted out of the per-call path).
    w1b, b1f, w2b, b2f = prepare_params(w1, b1, w2, b2)
    w1b, b1f, w2b, b2f = jax.block_until_ready((w1b, b1f, w2b, b2f))

    out = classifier_forward(x, w1b, b1f, w2b, b2f, OUT_DIM)
    out = jax.block_until_ready(out)

    ref = reference_forward(x, w1, b1, w2, b2)
    assert out.shape == (B, OUT_DIM)
    assert jnp.allclose(out, ref, atol=2e-3, rtol=2e-3), (
        float(jnp.max(jnp.abs(out - ref))))

    print("KERNEL_OK")
</pallas_src>

<mosaic_0001>
module attributes {stable_mosaic.version = 11 : i64} {
  func.func @classifier_kernel(%arg0: i32, %arg1: memref<104x768xf32, #tpu.memory_space<vmem>>, %arg2: memref<768x384xbf16, #tpu.memory_space<vmem>>, %arg3: memref<1x384xf32, #tpu.memory_space<vmem>>, %arg4: memref<384x128xbf16, #tpu.memory_space<vmem>>, %arg5: memref<1x128xf32, #tpu.memory_space<vmem>>, %arg6: memref<104x4xf32, #tpu.memory_space<vmem>>) attributes {dimension_semantics = [#tpu.dimension_semantics<parallel>], iteration_bounds = array<i64: 2>, scalar_prefetch = 0 : i64, scratch_operands = 0 : i64, tpu.core_type = #tpu.core_type<tc>, window_params = [{transform_indices = @transform_0, window_bounds = array<i64: 104, 768>}, {pipeline_mode = #tpu.pipeline_mode<synchronous>, transform_indices = @transform_1, window_bounds = array<i64: 768, 384>}, {pipeline_mode = #tpu.pipeline_mode<synchronous>, transform_indices = @transform_2, window_bounds = array<i64: 1, 384>}, {pipeline_mode = #tpu.pipeline_mode<synchronous>, transform_indices = @transform_3, window_bounds = array<i64: 384, 128>}, {pipeline_mode = #tpu.pipeline_mode<synchronous>, transform_indices = @transform_4, window_bounds = array<i64: 1, 128>}, {transform_indices = @transform_5, window_bounds = array<i64: 104, 4>}]} {
    %c0 = arith.constant 0 : index
    %c0_0 = arith.constant 0 : index
    %0 = vector.load %arg1[%c0, %c0_0] : memref<104x768xf32, #tpu.memory_space<vmem>>, vector<104x768xf32>
    %1 = arith.truncf %0 : vector<104x768xf32> to vector<104x768xbf16>
    %c0_1 = arith.constant 0 : index
    %c0_2 = arith.constant 0 : index
    %2 = vector.load %arg2[%c0_1, %c0_2] : memref<768x384xbf16, #tpu.memory_space<vmem>>, vector<768x384xbf16>
    %cst = arith.constant dense<0.000000e+00> : vector<104x384xf32>
    %3 = tpu.matmul %1, %2, %cst {dimension_numbers = #tpu.dot_dimension_numbers<[1], [0], [0], [1], [0, 0, 1, 1], [], []>} : vector<104x768xbf16>, vector<768x384xbf16>, vector<104x384xf32> -> vector<104x384xf32>
    %c0_3 = arith.constant 0 : index
    %c0_4 = arith.constant 0 : index
    %4 = vector.load %arg3[%c0_3, %c0_4] : memref<1x384xf32, #tpu.memory_space<vmem>>, vector<1x384xf32>
    %5 = vector.broadcast %4 : vector<1x384xf32> to vector<104x384xf32>
    %6 = arith.addf %3, %5 : vector<104x384xf32>
    %cst_5 = arith.constant 0.000000e+00 : f32
    %7 = vector.broadcast %cst_5 : f32 to vector<104x384xf32>
    %8 = arith.maximumf %6, %7 : vector<104x384xf32>
    %9 = arith.truncf %8 : vector<104x384xf32> to vector<104x384xbf16>
    %c0_6 = arith.constant 0 : index
    %c0_7 = arith.constant 0 : index
    %10 = vector.load %arg4[%c0_6, %c0_7] : memref<384x128xbf16, #tpu.memory_space<vmem>>, vector<384x128xbf16>
    %cst_8 = arith.constant dense<0.000000e+00> : vector<104x128xf32>
    %11 = tpu.matmul %9, %10, %cst_8 {dimension_numbers = #tpu.dot_dimension_numbers<[1], [0], [0], [1], [0, 0, 1, 1], [], []>} : vector<104x384xbf16>, vector<384x128xbf16>, vector<104x128xf32> -> vector<104x128xf32>
    %c0_9 = arith.constant 0 : index
    %c0_10 = arith.constant 0 : index
    %12 = vector.load %arg5[%c0_9, %c0_10] : memref<1x128xf32, #tpu.memory_space<vmem>>, vector<1x128xf32>
    %13 = vector.broadcast %12 : vector<1x128xf32> to vector<104x128xf32>
    %14 = arith.addf %11, %13 : vector<104x128xf32>
    %15 = vector.extract_strided_slice %14 {offsets = [0, 0], sizes = [104, 4], strides = [1, 1]} : vector<104x128xf32> to vector<104x4xf32>
    %c0_11 = arith.constant 0 : index
    %c0_12 = arith.constant 0 : index
    %16 = vector.load %arg6[%c0_11, %c0_12] : memref<104x4xf32, #tpu.memory_space<vmem>>, vector<104x4xf32>
    tpu.vector_store %arg6[%c0_11, %c0_12], %15 {strides = array<i32>} : memref<104x4xf32, #tpu.memory_space<vmem>>, vector<104x4xf32>,
    return
  }
  func.func @transform_0(%arg0: i32) -> (i32, i32) {
    %c0_i32 = arith.constant 0 : i32
    %c0_i32_0 = arith.constant 0 : i32
    return %arg0, %c0_i32 : i32, i32
  }
  func.func @transform_1(%arg0: i32) -> (i32, i32) {
    %c0_i32 = arith.constant 0 : i32
    %c0_i32_0 = arith.constant 0 : i32
    %c0_i32_1 = arith.constant 0 : i32
    return %c0_i32, %c0_i32_0 : i32, i32
  }
  func.func @transform_2(%arg0: i32) -> (i32, i32) {
    %c0_i32 = arith.constant 0 : i32
    %c0_i32_0 = arith.constant 0 : i32
    %c0_i32_1 = arith.constant 0 : i32
    return %c0_i32, %c0_i32_0 : i32, i32
  }
  func.func @transform_3(%arg0: i32) -> (i32, i32) {
    %c0_i32 = arith.constant 0 : i32
    %c0_i32_0 = arith.constant 0 : i32
    %c0_i32_1 = arith.constant 0 : i32
    return %c0_i32, %c0_i32_0 : i32, i32
  }
  func.func @transform_4(%arg0: i32) -> (i32, i32) {
    %c0_i32 = arith.constant 0 : i32
    %c0_i32_0 = arith.constant 0 : i32
    %c0_i32_1 = arith.constant 0 : i32
    return %c0_i32, %c0_i32_0 : i32, i32
  }
  func.func @transform_5(%arg0: i32) -> (i32, i32) {
    %c0_i32 = arith.constant 0 : i32
    %c0_i32_0 = arith.constant 0 : i32
    return %arg0, %c0_i32 : i32, i32
  }
}

</mosaic_0001>

<bundles_post_ra>
// kernel: tpu_custom_call.1
= control target key start
LH: loop header
LB: loop body
LE: loop exit
PB: predicated region body
PF: predicated region fallthrough
CT: control target
= control target key end

     0   :  { %10 = vsyncpa [#allocation3], 0  ;;  %s4571_s0 = inlined_call_operand.hbm [shape: f32[200,768], index: 0, kind: input, shape index: {}]   ;;  %s4572_s1 = inlined_call_operand.hbm [shape: bf16[768,384], index: 1, kind: input, shape index: {}]   ;;  %s4573_s2 = inlined_call_operand.vmem [shape: f32[1,384], index: 2, kind: input, shape index: {}]   ;;  %s4574_s3 = inlined_call_operand.hbm [shape: bf16[384,128], index: 3, kind: input, shape index: {}]   ;;  %s4575_s4 = inlined_call_operand.vmem [shape: f32[1,128], index: 4, kind: input, shape index: {}]   ;;  %s4576_s5 = inlined_call_operand.vmem [shape: f32[200,4], index: 5, kind: output, shape index: {}]  }
   0x1   :  { %12 = vsyncpa [#allocation3 + $0x1], 0 }
   0x2   :  { %13 = vsyncpa [#allocation5], 0  ;;  %s3861_s18 = smov 0   ;;  %s3863_s19 = smov 0  }
   0x3   :  { %s3865_s20 = smov 0   ;;  %s3867_s21 = smov 0  }
   0x4 LB: > { %s3880_s22 = sadd.s32 4294967295, %s3786_s21   ;;  %s3883_s23 = sadd.s32 1, %s3786_s21   ;;  %s3786_s21 = sphi %s3867_s21, %s4597_s21   ;;  %s3782_s20 = sphi %s3865_s20, %s4596_s20   ;;  %s3778_s19 = sphi %s3863_s19, %s4595_s19   ;;  %s3774_s18 = sphi %s3861_s18, %s4594_s18  }
   0x5   : > { %s23_s24 = ssub.s32 %s3786_s21, %s3883_s23  ;;  %s26_s25 = sadd.s32 1, %s3782_s20 }
   0x6   : > { %p24_p0 = scmp.eq.s32.totalorder %s23_s24, 0  ;;  %p33_p1 = scmp.ne.s32.totalorder %s3782_s20, %s3778_s19 }
   0x7   : > { %p34_p2 = scmp.eq.s32.totalorder %s3786_s21, 0  ;;  %p39_p3 = scmp.ne.s32.totalorder %s3778_s19, %s3774_s18 }
   0x8   : > { %s3893_s26 = scalar_select %p24_p0, %s3782_s20, %s26_s25  }
   0x9   : > { %p3895_p4 = por %p34_p2, %p33_p1  ;;  %p4577_p5 = scmp.eq.s32.totalorder %s3880_s22, 0 }
   0xa   : > { %p147_p6 = scmp.eq.s32.totalorder %s3880_s22, 1  ;;  %p2697_p7 = scmp.ge.s32.totalorder %s3786_s21, 1 }
   0xb   : > { %s4580_s27 = scalar_select %p3895_p4, 1, 0 }
   0xc   : > { %p3904_p8 = por %p4577_p5, %p39_p3  ;;  %p160_p9 = scmp.lt.s32.totalorder %s3786_s21, 3 }
   0xd   : > { %p3909_p10 = por %p147_p6, %p33_p1  ;;  %s3820_s6 = smov [#allocation4]  }
   0xe   : > { %s4581_s28 = scalar_select %p3904_p8, 1, 0 }
   0xf   : > { %s4582_s29 = scalar_select %p3909_p10, 1, 0 }
  0x10   : > { %p3913_p11 = pnand %p2697_p7, %p160_p9  ;;  %s172_s7 = sshll.u32 %s3820_s6, 4  ;;  %s173_s7 = int_to_ptr.vmem [resolvable:$true] %s172_s7 }
  0x11   : > { %s3821_s9 = smov [#allocation6]   ;;  %s3632_s13 = scalar_lea.hbm %s4572_s1, 18432 }
  0x12   : > { %s4583_s30 = scalar_select %p3913_p11, 1, 0 }
  0x13   : > { %p3293_p12 = pneg %p3913_p11  ;;  %s188_s10 = sshll.u32 %s3821_s9, 4  ;;  %s3925_s10 = int_to_ptr.vmem [resolvable:$true] %s188_s10 }
  0x14   : > { %p3633_p0 = scmp.ne.s32.totalorder %s4572_s1, %s3632_s13  ;;  %p3639_p6 = scmp.lt.u32.totalorder %s3632_s13, %s4572_s1 }
  0x15   : > { %p3921_p13 = pnand %p3293_p12, %p4577_p5 }
  0x17   : > { %p3634_p1 = pneg %p3921_p13 }
  0x19   : > { %p3635_p2 = pnand %p3634_p1, %p3633_p0 }
  0x1b   : > { %p3636_p3 = pneg %p3635_p2 }
  0x1d   : > { %p3641_p7 = pnand %p3639_p6, %p3636_p3 }
  0x1f   : > { %3644 = shalt.err (!%p3641_p7)
}
  0x20   : > { %s3645_s18 = scalar_lea.vmem %s173_s7, 18432  ;;  %p3653_p10 = scmp.lt.s32.totalorder %s173_s7, %s173_s7 }
  0x21   : > { %p3646_p9 = scmp.ne.s32.totalorder %s173_s7, %s3645_s18  ;;  %p3654_p8 = scmp.lt.s32.totalorder %s3645_s18, %s3645_s18 }
  0x23   : > { %p3648_p12 = pnand %p3646_p9, %p3634_p1  ;;  %p3655_p11 = por %p3654_p8, %p3653_p10 }
  0x25   : > { %p3649_p5 = pneg %p3648_p12 }
  0x27   : > { %p3656_p4 = pnand %p3655_p11, %p3649_p5 }
  0x29   : > { %3659 = shalt.err (!%p3656_p4)
}
  0x2a   : > { %s3822_s24 = smov 192   ;;  %s3823_s25 = smov 12  }
  0x2b   : > { %3296 = dma.hbm_to_vmem [thread:$0]  (!%p3921_p13), %s4572_s1, 18432, %s173_s7, [#allocation5], %s3822_s24, %s3822_s24, %s3823_s25  }
  0x2c   : > { %s3660_s13 = scalar_lea.hbm %s4574_s3, 3072 }
  0x2d   : > { %p3661_p0 = scmp.ne.s32.totalorder %s4574_s3, %s3660_s13  ;;  %p3667_p8 = scmp.lt.u32.totalorder %s3660_s13, %s4574_s3 }
  0x2f   : > { %p3663_p4 = pnand %p3661_p0, %p3634_p1 }
  0x31   : > { %p3664_p5 = pneg %p3663_p4 }
  0x33   : > { %p3669_p10 = pnand %p3667_p8, %p3664_p5 }
  0x35   : > { %3672 = shalt.err (!%p3669_p10)
}
  0x36   : > { %s3673_s7 = scalar_lea.vmem %s3925_s10, 3072  ;;  %p3681_p6 = scmp.lt.s32.totalorder %s3925_s10, %s3925_s10 }
  0x37   : > { %p3674_p11 = scmp.ne.s32.totalorder %s3925_s10, %s3673_s7  ;;  %p3682_p7 = scmp.lt.s32.totalorder %s3673_s7, %s3673_s7 }
  0x39   : > { %p3676_p2 = pnand %p3674_p11, %p3634_p1  ;;  %p3683_p9 = por %p3682_p7, %p3681_p6 }
  0x3b   : > { %p3677_p3 = pneg %p3676_p2 }
  0x3d   : > { %p3684_p12 = pnand %p3683_p9, %p3677_p3 }
  0x3f   : > { %3687 = shalt.err (!%p3684_p12)
}
  0x40   : > { %s3824_s18 = smov 64   ;;  %s3825_s24 = smov 4  }
  0x41   : > { %3299 = dma.hbm_to_vmem [thread:$0]  (!%p3921_p13), %s4574_s3, 3072, %s3925_s10, [#allocation5], %s3824_s18, %s3824_s18, %s3825_s24  }
  0x42   : > { %p2700_p0 = scmp.ge.s32.totalorder %s3786_s21, 2 }
  0x43   : > { %p4585_p1 = scmp.ne.s32.totalorder (!%p2700_p0), %s4580_s27, 0 }
  0x44   : > { %201 = sbr.rel (%p2700_p0) target bundleno = 111 (0x6f), region = 32 }
  0x4b   : > { %204 = sbr.rel (!%p4585_p1) target bundleno = 111 (0x6f), region = 36  ;;  %s205_s9 = sand.u32 (%p4585_p1), 1, %s3782_s20  }
  0x4c   : > { %s210_s11 = smul.u32 (%p4585_p1), 13, %s3786_s21  ;;  %s3982_s15 = scalar_lea.sflag (%p4585_p1), [#allocation3], %s205_s9 }
  0x4d   : > { %s3280_s12 = smul.u32 (%p4585_p1), 624, %s205_s9 }
  0x4e   : > { %s211_s13 = ssub.s32 (%p4585_p1), 25, %s210_s11 }
  0x4f   : > { %p212_p4 = scmp.lt.s32.totalorder (%p4585_p1), %s211_s13, 13  ;;  %s209_s10 = scalar_lea.vmem (%p4585_p1), [#allocation2], %s3280_s12 }
  0x52   : > { %s4599_s13 = smov (!%p212_p4, %s211_s13), 13 }
  0x53   : > { %s3979_s14 = smul.u32 768, %s4599_s13 }
  0x55   : > { %s217_s8 = ssub.s32 9984, %s3979_s14 }
  0x56   : > { %218 = vsyncadd %s3982_s15, %s217_s8  ;;  %p2703_p13 = scmp.ne.s32.totalorder %s3979_s14, 0  ;;  %s3302_s27 = smul.u32 9984, %s3786_s21 }
  0x57   : > { %s224_s16 = sshll.u32 %s209_s10, 4  ;;  %s3692_s21 = scalar_lea.hbm %s4571_s0, 19200  ;;  %s3992_s16 = int_to_ptr.vmem [resolvable:$true] %s224_s16 }
  0x58   : > { %s3990_s18 = scalar_lea.hbm %s4571_s0, %s3302_s27 }
  0x59   : > { %s3688_s24 = scalar_lea.hbm %s3990_s18, %s3979_s14  ;;  %p3693_p11 = scmp.lt.u32.totalorder %s3990_s18, %s4571_s0 }
  0x5a   : > { %p3689_p5 = scmp.ne.s32.totalorder %s3990_s18, %s3688_s24  ;;  %p3694_p2 = scmp.lt.u32.totalorder %s3692_s21, %s3688_s24 }
  0x5b   : > { %p3696_p6 = scmp.lt.u32.totalorder %s3688_s24, %s3990_s18 }
  0x5c   : > { %p3690_p8 = pnand %p3689_p5, %p2703_p13  ;;  %p3695_p3 = por %p3694_p2, %p3693_p11 }
  0x5e   : > { %p3691_p10 = pneg %p3690_p8  ;;  %p3697_p7 = por %p3696_p6, %p3695_p3 }
  0x60   : > { %p3698_p9 = pnand %p3697_p7, %p3691_p10 }
  0x62   : > { %3701 = shalt.err (!%p3698_p9)
}
  0x63   : > { %s3702_s12 = scalar_lea.vmem %s3992_s16, %s3979_s14  ;;  %s3826_s13 = smov [#allocation2]  }
  0x64   : > { %p3703_p12 = scmp.ne.s32.totalorder %s3992_s16, %s3702_s12  ;;  %s3706_s8 = sshll.u32 %s3826_s13, 4  ;;  %s3707_s8 = int_to_ptr.vmem [resolvable:$false] %s3706_s8 }
  0x65   : > { %s3708_s10 = scalar_lea.vmem %s3707_s8, 19968  ;;  %p3709_p4 = scmp.lt.s32.totalorder %s3992_s16, %s3707_s8 }
  0x66   : > { %p3704_p0 = pnand %p3703_p12, %p2703_p13  ;;  %p3710_p5 = scmp.lt.s32.totalorder %s3708_s10, %s3702_s12 }
  0x68   : > { %p3705_p1 = pneg %p3704_p0  ;;  %p3711_p8 = por %p3710_p5, %p3709_p4 }
  0x6a   : > { %p3712_p11 = pnand %p3711_p8, %p3705_p1 }
  0x6c   : > { %3715 = shalt.err (!%p3712_p11)
}
  0x6d   : > { %s3827_s27 = smov 768   ;;  %s3828_s17 = smov 48  }
  0x6e   : > { %230 = dma.hbm_to_vmem [thread:$0]  (%p2703_p13), %s3990_s18, %s3979_s14, %s3992_s16, %s3982_s15, %s3827_s27, %s3827_s27, %s3828_s17  }
  0x6f PF: > { %p4586_p10 = scmp.ne.s32.totalorder %s4583_s30, 0 }
  0x70   : > { %s4022_s7 = sand.u32 (!%p4586_p10), 1, %s3778_s19   ;;  %p4587_p2 = scmp.ne.s32.totalorder (!%p4586_p10), %s4581_s28, 0 }
  0x71   : > { %236 = sbr.rel (%p4586_p10) target bundleno = 887 (0x377), region = 40  ;;  %s239_s25 = scalar_lea.sflag (!%p4586_p10), [#allocation3], %s4022_s7 }
  0x72   : > { %s3282_s24 = smul.u32 (!%p4586_p10), 624, %s4022_s7 }
  0x74   : > { %s4026_s6 = scalar_lea.vmem (!%p4586_p10), [#allocation2], %s3282_s24 }
  0x78   : > { %3765 = dma.done.wait (%p4587_p2), %s239_s25, 9984  }
  0x79   : > { %3767 = vsyncadd (%p4587_p2), %s239_s25, 4294957312  ;;  %p4588_p13 = scmp.eq.s32.totalorder %s3880_s22, 0 }
  0x7b   : > { %3769 = dma.done.wait (%p4588_p13), [#allocation5], 21504   ;;  %p4589_p3 = pmov %p4588_p13 }
  0x7c   : > { %v3412_v0 = vld [vmem:[#allocation4 + $0x4] ss:$12 sps:$4 sm:$0xff]   ;;  %v3414_v1 = vld [vmem:[#allocation4 + $0xc8] ss:$12 sps:$4 sm:$0xff]   ;;  %v3415_v2 = vld [vmem:[#allocation4] ss:$12 sps:$4 sm:$0xff]  }
  0x7d   : > { %3771 = vsyncadd (%p4589_p3), [#allocation5], 4294945792  ;;  %1385 = vmatprep.subr.bf16.mxu0 %v3412_v0  ;;  %2891 = vmatprep.subr.bf16.mxu1 %v3414_v1  ;;  %v3416_v3 = vld [vmem:[#allocation4 + $0x8] ss:$12 sps:$4 sm:$0xff]   ;;  %v3419_v5 = vld [vmem:[#allocation4 + $0xe0] ss:$12 sps:$4 sm:$0xff]  }
  0x7e   : > { %1386 = vmatpush1.bf16.msra.mxu0 %v3415_v2  ;;  %v3417_v4 = vld [vmem:[#allocation4 + $0x1c] ss:$12 sps:$4 sm:$0xff]   ;;  %2892 = vmatpush3.bf16.msra.mxu1 %v3416_v3  ;;  %v3420_v6 = vld [vmem:[#allocation4 + $0x18] ss:$12 sps:$4 sm:$0xff]   ;;  %v3421_v7 = vld [vmem:[#allocation4 + $0x20] ss:$12 sps:$4 sm:$0xff]  }
  0x7f   : > { %1387 = vmatprep.subr.bf16.mxu0 %v3417_v4  ;;  %2893 = vmatprep.subr.bf16.mxu1 %v3419_v5  ;;  %v3422_v8 = vld [vmem:[#allocation4 + $0x34] ss:$12 sps:$4 sm:$0xff]   ;;  %v3424_v9 = vld [vmem:[#allocation4 + $0xf8] ss:$12 sps:$4 sm:$0xff]   ;;  %v3425_v10 = vld [vmem:[#allocation4 + $0x30] ss:$12 sps:$4 sm:$0xff]  }
  0x80   : > { %v3426_v11 = vld [vmem:[#allocation4 + $0x38] ss:$12 sps:$4 sm:$0xff]   ;;  %v3429_v13 = vld [vmem:[#allocation4 + $0x110] ss:$12 sps:$4 sm:$0xff]   ;;  %v3430_v14 = vld [vmem:[#allocation4 + $0x48] ss:$12 sps:$4 sm:$0xff]  }
  0x81   : > { %v3427_v12 = vld [vmem:[#allocation4 + $0x4c] ss:$12 sps:$4 sm:$0xff]   ;;  %v3431_v15 = vld [vmem:[#allocation4 + $0x50] ss:$12 sps:$4 sm:$0xff]   ;;  %v3434_v17 = vld [vmem:[#allocation4 + $0x128] ss:$12 sps:$4 sm:$0xff]  }
  0x82   : > { %1388 = vmatpush1.bf16.msra.mxu0 %v3420_v6  ;;  %2894 = vmatpush3.bf16.msra.mxu1 %v3421_v7  ;;  %v3432_v16 = vld [vmem:[#allocation4 + $0x64] ss:$12 sps:$4 sm:$0xff]   ;;  %v3435_v18 = vld [vmem:[#allocation4 + $0x60] ss:$12 sps:$4 sm:$0xff]   ;;  %v3436_v19 = vld [vmem:[#allocation4 + $0x68] ss:$12 sps:$4 sm:$0xff]  }
  0x83   : > { %1389 = vmatprep.subr.bf16.mxu0 %v3422_v8  ;;  %2895 = vmatprep.subr.bf16.mxu1 %v3424_v9  ;;  %v3437_v20 = vld [vmem:[#allocation4 + $0x7c] ss:$12 sps:$4 sm:$0xff]   ;;  %v3439_v21 = vld [vmem:[#allocation4 + $0x140] ss:$12 sps:$4 sm:$0xff]   ;;  %v3440_v22 = vld [vmem:[#allocation4 + $0x78] ss:$12 sps:$4 sm:$0xff]  }
  0x84   : > { %v3441_v23 = vld [vmem:[#allocation4 + $0x80] ss:$12 sps:$4 sm:$0xff]   ;;  %v3444_v25 = vld [vmem:[#allocation4 + $0x158] ss:$12 sps:$4 sm:$0xff]   ;;  %v3445_v26 = vld [vmem:[#allocation4 + $0x90] ss:$12 sps:$4 sm:$0xff]  }
  0x85   : > { %v3442_v24 = vld [vmem:[#allocation4 + $0x94] ss:$12 sps:$4 sm:$0xff]   ;;  %v3446_v27 = vld [vmem:[#allocation4 + $0x98] ss:$12 sps:$4 sm:$0xff]   ;;  %v3449_v29 = vld [vmem:[#allocation4 + $0x170] ss:$12 sps:$4 sm:$0xff]  }
  0x86   : > { %1390 = vmatpush1.bf16.msra.mxu0 %v3425_v10  ;;  %2896 = vmatpush3.bf16.msra.mxu1 %v3426_v11  ;;  %v3447_v28 = vld [vmem:[#allocation4 + $0xac] ss:$12 sps:$4 sm:$0xff]   ;;  %v3450_v30 = vld [vmem:[#allocation4 + $0xa8] ss:$12 sps:$4 sm:$0xff]   ;;  %v3451_v33 = vld [vmem:[#allocation4 + $0xb0] ss:$12 sps:$4 sm:$0xff]  }
  0x87   : > { %1391 = vmatprep.subr.bf16.mxu0 %v3427_v12  ;;  %2897 = vmatprep.subr.bf16.mxu1 %v3429_v13  ;;  %v289_v31 = vld [vmem:[%s4026_s6 + $0x8] sm:$0xff]  ;;  %v295_v32 = vld [vmem:[%s4026_s6 + $0x38] sm:$0xff]  ;;  %v3452_v35 = vld [vmem:[#allocation4 + $0xc4] ss:$12 sps:$4 sm:$0xff]   ;;  %vm3830_vm0 = vmmov 0   ;;  %s3283_s14 = smul.u32 104, %s4022_s7 }
  0x88   : > { %v367_v34 = vpack.c.bf16 %v295_v32, %v289_v31  ;;  %v288_v36 = vld [vmem:[%s4026_s6] sm:$0xff]  ;;  %v294_v37 = vld [vmem:[%s4026_s6 + $0x30] sm:$0xff]  ;;  %v301_v38 = vld [vmem:[%s4026_s6 + $0x68] sm:$0xff]  ;;  %vm2387_vm1 = vcmask 31744   ;;  %p4590_p6 = scmp.ne.s32.totalorder %s4582_s29, 0 }
  0x89   : > { %v307_v39 = vld [vmem:[%s4026_s6 + $0x98] sm:$0xff]  ;;  %v4042_v40 = vpack.c.bf16 %v294_v37, %v288_v36  ;;  %v3458_v45 = vld [vmem:[#allocation4 + $0xf4] ss:$12 sps:$4 sm:$0xff]   ;;  %v313_v48 = vld [vmem:[%s4026_s6 + $0xc8] sm:$0xff]  ;;  %s4440_s18 = scalar_lea.vmem [#allocation7], %s3283_s14   ;;  %s2408_s21 = smul.u32 (%p4590_p6), 13, %s3880_s22 }
  0x8a   : > { %1392 = vmatpush1.bf16.msra.mxu0 %v3430_v14  ;;  %2898 = vmatpush3.bf16.msra.mxu1 %v3431_v15  ;;  %v3454_v41 = vld [vmem:[#allocation4 + $0xc0] ss:$12 sps:$4 sm:$0xff]   ;;  %v3455_v42 = vld [vmem:[#allocation4 + $0xdc] ss:$12 sps:$4 sm:$0xff]   ;;  %v4044_v43 = vpack.c.bf16 %v307_v39, %v301_v38  ;;  %v3457_v44 = vld [vmem:[#allocation4 + $0xd8] ss:$12 sps:$4 sm:$0xff]  }
  0x8b   : > { %1393 = vmatprep.subr.bf16.mxu0 %v3432_v16  ;;  %2899 = vmatprep.subr.bf16.mxu1 %v3434_v17  ;;  %v300_v46 = vld [vmem:[%s4026_s6 + $0x60] sm:$0xff]  ;;  %v306_v47 = vld [vmem:[%s4026_s6 + $0x90] sm:$0xff]  ;;  %v319_v49 = vld [vmem:[%s4026_s6 + $0xf8] sm:$0xff]  ;;  %s2890_s9 = smul.u32 (%p4590_p6), 104, %s3880_s22  ;;  %s2409_s11 = ssub.s32 (%p4590_p6), 25, %s2408_s21 }
  0x8c   : > { %1720 = vmatprep.mubr.bf16.mxu1 %v367_v34  ;;  %1417 = vmatprep.mubr.bf16.mxu0 %v367_v34  ;;  %v4052_v50 = vpack.c.bf16 %v306_v47, %v300_v46  ;;  %v3460_v51 = vld [vmem:[#allocation4 + $0xf0] ss:$12 sps:$4 sm:$0xff]   ;;  %v3461_v52 = vld [vmem:[#allocation4 + $0x10c] ss:$12 sps:$4 sm:$0xff]   ;;  %v4054_v53 = vpack.c.bf16 %v319_v49, %v313_v48  ;;  %v3472_v54 = vld [vmem:[#allocation4 + $0x248] ss:$12 sps:$4 sm:$0xff]  }
  0x8d   : > { %v3463_v55 = vld [vmem:[#allocation4 + $0x108] ss:$12 sps:$4 sm:$0xff]   ;;  %v3464_v56 = vld [vmem:[#allocation4 + $0x124] ss:$12 sps:$4 sm:$0xff]   ;;  %v3477_v61 = vld [vmem:[#allocation4 + $0x260] ss:$12 sps:$4 sm:$0xff]   ;;  %s4486_s8 = scalar_lea.vmem (%p4590_p6), %s4576_s5, %s2890_s9  }
  0x8e   : > { %1394 = vmatpush1.bf16.msra.mxu0 %v3435_v18  ;;  %2900 = vmatpush3.bf16.msra.mxu1 %v3436_v19  ;;  %v312_v57 = vld [vmem:[%s4026_s6 + $0xc0] sm:$0xff]  ;;  %v318_v59 = vld [vmem:[%s4026_s6 + $0xf0] sm:$0xff]  ;;  %v325_v60 = vld [vmem:[%s4026_s6 + $0x128] sm:$0xff]  ;;  %p2410_p7 = scmp.lt.s32.totalorder (%p4590_p6), %s2409_s11, 13 }
  0x8f   : > { %1395 = vmatprep.subr.bf16.mxu0 %v3437_v20  ;;  %2901 = vmatprep.subr.bf16.mxu1 %v3439_v21  ;;  %v3474_v58 = vld [vmem:[#allocation4 + $0x188] ss:$12 sps:$4 sm:$0xff]   ;;  %v3479_v63 = vld [vmem:[#allocation4 + $0x1a0] ss:$12 sps:$4 sm:$0xff]   ;;  %v4062_v0 = vpack.c.bf16 %v318_v59, %v312_v57  ;;  %v3469_v4 = vld [vmem:[#allocation4 + $0x138] ss:$12 sps:$4 sm:$0xff]  }
  0x90   : > { %v331_v62 = vld [vmem:[%s4026_s6 + $0x158] sm:$0xff]  ;;  %v3470_v6 = vld [vmem:[#allocation4 + $0x154] ss:$12 sps:$4 sm:$0xff]   ;;  %v337_v11 = vld [vmem:[%s4026_s6 + $0x188] sm:$0xff] }
  0x91   : > { %v3466_v1 = vld [vmem:[#allocation4 + $0x120] ss:$12 sps:$4 sm:$0xff]   ;;  %v3467_v2 = vld [vmem:[#allocation4 + $0x13c] ss:$12 sps:$4 sm:$0xff]   ;;  %v4064_v3 = vpack.c.bf16 %v331_v62, %v325_v60  ;;  %v3483_v5 = vld [vmem:[#allocation4 + $0x278] ss:$12 sps:$4 sm:$0xff]  }
  0x92   : > { %1396 = vmatpush1.bf16.msra.mxu0 %v3440_v22  ;;  %2902 = vmatpush3.bf16.msra.mxu1 %v3441_v23  ;;  %v3484_v7 = vld [vmem:[#allocation4 + $0x1b8] ss:$12 sps:$4 sm:$0xff]   ;;  %v3488_v10 = vld [vmem:[#allocation4 + $0x290] ss:$12 sps:$4 sm:$0xff]   ;;  %v3478_v18 = vld [vmem:[#allocation4 + $0x168] ss:$12 sps:$4 sm:$0xff]  }
  0x93   : > { %1397 = vmatprep.subr.bf16.mxu0 %v3442_v24  ;;  %2903 = vmatprep.subr.bf16.mxu1 %v3444_v25  ;;  %v324_v8 = vld [vmem:[%s4026_s6 + $0x120] sm:$0xff]  ;;  %v330_v9 = vld [vmem:[%s4026_s6 + $0x150] sm:$0xff]  ;;  %v343_v12 = vld [vmem:[%s4026_s6 + $0x1b8] sm:$0xff] }
  0x94   : > { %v3489_v13 = vld [vmem:[#allocation4 + $0x1d0] ss:$12 sps:$4 sm:$0xff]   ;;  %v4072_v14 = vpack.c.bf16 %v330_v9, %v324_v8  ;;  %v3475_v16 = vld [vmem:[#allocation4 + $0x16c] ss:$12 sps:$4 sm:$0xff]   ;;  %v4074_v17 = vpack.c.bf16 %v343_v12, %v337_v11  ;;  %v3493_v19 = vld [vmem:[#allocation4 + $0x2a8] ss:$12 sps:$4 sm:$0xff]  }
  0x95   : > { %v3473_v15 = vld [vmem:[#allocation4 + $0x150] ss:$12 sps:$4 sm:$0xff]   ;;  %v3494_v21 = vld [vmem:[#allocation4 + $0x1e8] ss:$12 sps:$4 sm:$0xff]   ;;  %v3498_v24 = vld [vmem:[#allocation4 + $0x2c0] ss:$12 sps:$4 sm:$0xff]  }
  0x96   : > { %1398 = vmatpush1.bf16.msra.mxu0 %v3445_v26  ;;  %2904 = vmatpush3.bf16.msra.mxu1 %v3446_v27  ;;  %v3482_v20 = vld [vmem:[#allocation4 + $0x184] ss:$12 sps:$4 sm:$0xff]   ;;  %v349_v25 = vld [vmem:[%s4026_s6 + $0x1e8] sm:$0xff]  ;;  %v355_v26 = vld [vmem:[%s4026_s6 + $0x218] sm:$0xff] }
  0x97   : > { %1399 = vmatprep.subr.bf16.mxu0 %v3447_v28  ;;  %2905 = vmatprep.subr.bf16.mxu1 %v3449_v29  ;;  %v336_v22 = vld [vmem:[%s4026_s6 + $0x180] sm:$0xff]  ;;  %v342_v23 = vld [vmem:[%s4026_s6 + $0x1b0] sm:$0xff]  ;;  %v4084_v31 = vpack.c.bf16 %v355_v26, %v349_v25  ;;  %v361_v39 = vld [vmem:[%s4026_s6 + $0x248] sm:$0xff] }
  0x98   : > { %v3499_v27 = vld [vmem:[#allocation4 + $0x200] ss:$12 sps:$4 sm:$0xff]   ;;  %v4082_v29 = vpack.c.bf16 %v342_v23, %v336_v22  ;;  %v3485_v32 = vld [vmem:[#allocation4 + $0x198] ss:$12 sps:$4 sm:$0xff]   ;;  %v3508_v37 = vld [vmem:[#allocation4 + $0x2f0] ss:$12 sps:$4 sm:$0xff]  }
  0x99   : > { %v3480_v28 = vld [vmem:[#allocation4 + $0x180] ss:$12 sps:$4 sm:$0xff]   ;;  %v3504_v36 = vld [vmem:[#allocation4 + $0x218] ss:$12 sps:$4 sm:$0xff]   ;;  %v3547_v23 = vld [vmem:[#allocation4 + $0x350] ss:$12 sps:$4 sm:$0xff]  }
  0x9a   : > { %1400 = vmatpush1.bf16.msra.mxu0 %v3450_v30  ;;  %2906 = vmatpush3.bf16.msra.mxu1 %v3451_v33  ;;  %v3487_v30 = vld [vmem:[#allocation4 + $0x19c] ss:$12 sps:$4 sm:$0xff]   ;;  %v3503_v33 = vld [vmem:[#allocation4 + $0x2d8] ss:$12 sps:$4 sm:$0xff]   ;;  %v3492_v34 = vld [vmem:[#allocation4 + $0x1b4] ss:$12 sps:$4 sm:$0xff]  }
  0x9b   : > { %1401 = vmatprep.subr.bf16.mxu0 %v3452_v35  ;;  %2949 = vmatprep.subr.bf16.mxu1 %v3472_v54  ;;  %v348_v35 = vld [vmem:[%s4026_s6 + $0x1e0] sm:$0xff]  ;;  %v354_v38 = vld [vmem:[%s4026_s6 + $0x210] sm:$0xff]  ;;  %v291_v48 = vld [vmem:[%s4026_s6 + $0x18] sm:$0xff] }
  0x9c   : > { %v3502_v46 = vld [vmem:[#allocation4 + $0x1e4] ss:$12 sps:$4 sm:$0xff]   ;;  %v297_v49 = vld [vmem:[%s4026_s6 + $0x48] sm:$0xff]  ;;  %v303_v59 = vld [vmem:[%s4026_s6 + $0x78] sm:$0xff] }
  0x9d   : > { %1721 = vmatmul.mubr.bf16.vlgmr.msra.gmra.mrb[0].mxu1 %v4042_v40  ;;  %v360_v47 = vld [vmem:[%s4026_s6 + $0x240] sm:$0xff]  ;;  %v4106_v54 = vpack.c.bf16 %v297_v49, %v291_v48  ;;  %v290_v57 = vld [vmem:[%s4026_s6 + $0x10] sm:$0xff]  ;;  %v309_v60 = vld [vmem:[%s4026_s6 + $0xa8] sm:$0xff] }
  0x9e   : > { %1402 = vmatpush1.bf16.msra.mxu0 %v3454_v41  ;;  %1728 = vmatprep.mubr.bf16.mxu1 %v4044_v43  ;;  %v3509_v41 = vld [vmem:[#allocation4 + $0x230] ss:$12 sps:$4 sm:$0xff]   ;;  %v3537_v9 = vld [vmem:[#allocation4 + $0x320] ss:$12 sps:$4 sm:$0xff]  }
  0x9f   : > { %1403 = vmatprep.subr.bf16.mxu0 %v3455_v42  ;;  %2950 = vmatpush3.bf16.msra.mxu1 %v3474_v58  ;;  %v4093_v42 = vpack.c.bf16 %v354_v38, %v348_v35  ;;  %v296_v58 = vld [vmem:[%s4026_s6 + $0x40] sm:$0xff]  ;;  %v321_v8 = vld [vmem:[%s4026_s6 + $0x108] sm:$0xff]  ;;  %v339_v35 = vld [vmem:[%s4026_s6 + $0x198] sm:$0xff] }
  0xa0   : > { %2951 = vmatprep.subr.bf16.mxu1 %v3477_v61  ;;  %v3510_v61 = vld [vmem:[#allocation4 + $0x210] ss:$12 sps:$4 sm:$0xff]   ;;  %v4116_v62 = vpack.c.bf16 %v296_v58, %v290_v57  ;;  %v3516_v11 = vld [vmem:[#allocation4 + $0x240] ss:$12 sps:$4 sm:$0xff]   ;;  %v3561_v38 = vld [vmem:[#allocation4 + $0x458] ss:$12 sps:$4 sm:$0xff]  }
  0xa1   : > { %v333_v22 = vld [vmem:[%s4026_s6 + $0x168] sm:$0xff]  ;;  %v344_v48 = vld [vmem:[%s4026_s6 + $0x1c0] sm:$0xff]  ;;  %v351_v49 = vld [vmem:[%s4026_s6 + $0x1f8] sm:$0xff] }
  0xa2   : > { %1404 = vmatpush1.bf16.msra.mxu0 %v3457_v44  ;;  %v3497_v44 = vld [vmem:[#allocation4 + $0x1cc] ss:$12 sps:$4 sm:$0xff]   ;;  %v3522_v25 = vld [vmem:[#allocation4 + $0x270] ss:$12 sps:$4 sm:$0xff]   ;;  %v3543_v58 = vld [vmem:[#allocation4 + $0x2e8] ss:$12 sps:$4 sm:$0xff]  }
  0xa3   : > { %1405 = vmatprep.subr.bf16.mxu0 %v3458_v45  ;;  %2952 = vmatpush3.bf16.msra.mxu1 %v3479_v63  ;;  %v4095_v45 = vpack.c.bf16 %v361_v39, %v361_v39  ;;  %v3515_v63 = vld [vmem:[#allocation4 + $0x22c] ss:$12 sps:$4 sm:$0xff]  }
  0xa4   : > { %2953 = vmatprep.subr.bf16.mxu1 %v3483_v5  ;;  %v302_v5 = vld [vmem:[%s4026_s6 + $0x70] sm:$0xff] }
  0xa5   : > { %1729 = vmatmul.mubr.bf16.gmra.mrb[4].mxu1 %v4052_v50  ;;  %v3528_v39 = vld [vmem:[#allocation4 + $0x2a0] ss:$12 sps:$4 sm:$0xff]  }
  0xa6   : > { %1406 = vmatpush1.bf16.msra.mxu0 %v3460_v51  ;;  %1736 = vmatprep.mubr.bf16.mxu1 %v4054_v53  ;;  %v3500_v51 = vld [vmem:[#allocation4 + $0x1e0] ss:$12 sps:$4 sm:$0xff]  }
  0xa7   : > { %1407 = vmatprep.subr.bf16.mxu0 %v3461_v52  ;;  %2954 = vmatpush3.bf16.msra.mxu1 %v3484_v7  ;;  %v3507_v52 = vld [vmem:[#allocation4 + $0x1fc] ss:$12 sps:$4 sm:$0xff]  }
  0xa8   : > { %2955 = vmatprep.subr.bf16.mxu1 %v3488_v10  ;;  %v315_v7 = vld [vmem:[%s4026_s6 + $0xd8] sm:$0xff] }
  0xa9   : > { %v3541_v10 = vld [vmem:[#allocation4 + $0x3f8] ss:$12 sps:$4 sm:$0xff]  }
  0xaa   : > { %1408 = vmatpush1.bf16.msra.mxu0 %v3463_v55  ;;  %v3505_v55 = vld [vmem:[#allocation4 + $0x1f8] ss:$12 sps:$4 sm:$0xff]  }
  0xab   : > { %1409 = vmatprep.subr.bf16.mxu0 %v3464_v56  ;;  %2956 = vmatpush3.bf16.msra.mxu1 %v3489_v13  ;;  %v3512_v56 = vld [vmem:[#allocation4 + $0x214] ss:$12 sps:$4 sm:$0xff]   ;;  %v3521_v13 = vld [vmem:[#allocation4 + $0x25c] ss:$12 sps:$4 sm:$0xff]  }
  0xac   : > { %2957 = vmatprep.subr.bf16.mxu1 %v3493_v19  ;;  %v3546_v19 = vld [vmem:[#allocation4 + $0x410] ss:$12 sps:$4 sm:$0xff]  }
  0xad   : > { %1737 = vmatmul.mubr.bf16.gmra.mrb[8].mxu1 %v4062_v0 }
  0xae   : > { %1410 = vmatpush1.bf16.msra.mxu0 %v3466_v1  ;;  %1744 = vmatprep.mubr.bf16.mxu1 %v4064_v3  ;;  %v3513_v1 = vld [vmem:[#allocation4 + $0x228] ss:$12 sps:$4 sm:$0xff]  }
  0xaf   : > { %1411 = vmatprep.subr.bf16.mxu0 %v3467_v2  ;;  %2958 = vmatpush3.bf16.msra.mxu1 %v3494_v21  ;;  %v3532_v2 = vld [vmem:[#allocation4 + $0x308] ss:$12 sps:$4 sm:$0xff]  }
  0xb0   : > { %2959 = vmatprep.subr.bf16.mxu1 %v3498_v24  ;;  %v327_v21 = vld [vmem:[%s4026_s6 + $0x138] sm:$0xff] }
  0xb1   : > { %v3551_v24 = vld [vmem:[#allocation4 + $0x428] ss:$12 sps:$4 sm:$0xff]  }
  0xb2   : > { %1412 = vmatpush1.bf16.msra.mxu0 %v3469_v4  ;;  %v3518_v4 = vld [vmem:[#allocation4 + $0x244] ss:$12 sps:$4 sm:$0xff]  }
  0xb3   : > { %1413 = vmatprep.subr.bf16.mxu0 %v3470_v6  ;;  %2960 = vmatpush3.bf16.msra.mxu1 %v3499_v27  ;;  %v3536_v6 = vld [vmem:[#allocation4 + $0x3e0] ss:$12 sps:$4 sm:$0xff]  }
  0xb4   : > { %2961 = vmatprep.subr.bf16.mxu1 %v3503_v33  ;;  %v3527_v27 = vld [vmem:[#allocation4 + $0x28c] ss:$12 sps:$4 sm:$0xff]   ;;  %v332_v33 = vld [vmem:[%s4026_s6 + $0x160] sm:$0xff] }
  0xb5   : > { %1745 = vmatmul.mubr.bf16.gmra.mrb[12].mxu1 %v4072_v14 }
  0xb6   : > { %1414 = vmatpush1.bf16.msra.mxu0 %v3473_v15  ;;  %1752 = vmatprep.mubr.bf16.mxu1 %v4074_v17  ;;  %v3519_v15 = vld [vmem:[#allocation4 + $0x258] ss:$12 sps:$4 sm:$0xff]  }
  0xb7   : > { %1415 = vmatprep.subr.bf16.mxu0 %v3475_v16  ;;  %2962 = vmatpush3.bf16.msra.mxu1 %v3504_v36  ;;  %v3542_v16 = vld [vmem:[#allocation4 + $0x338] ss:$12 sps:$4 sm:$0xff]  }
  0xb8   : > { %2963 = vmatprep.subr.bf16.mxu1 %v3508_v37  ;;  %v345_v36 = vld [vmem:[%s4026_s6 + $0x1c8] sm:$0xff] }
  0xb9   : > { %v3557_v37 = vld [vmem:[#allocation4 + $0x380] ss:$12 sps:$4 sm:$0xff]  }
  0xba   : > { %1416 = vmatpush1.bf16.msra.mxu0 %v3478_v18  ;;  %v3524_v18 = vld [vmem:[#allocation4 + $0x274] ss:$12 sps:$4 sm:$0xff]  }
  0xbb   : > { %1486 = vmatprep.subr.bf16.mxu0 %v3482_v20  ;;  %2964 = vmatpush3.bf16.msra.mxu1 %v3509_v41  ;;  %v320_v20 = vld [vmem:[%s4026_s6 + $0x100] sm:$0xff] }
  0xbd   : > { %1418 = vmatmul.mubr.bf16.vlgmr.msra.gmra.mrb[0].mxu0 %v4042_v40  ;;  %1753 = vmatmul.mubr.bf16.gmra.mrb[16].mxu1 %v4082_v29  ;;  %v3490_v40 = vld [vmem:[#allocation4 + $0x1b0] ss:$12 sps:$4 sm:$0xff]  }
  0xbe   : > { %1487 = vmatpush1.bf16.msra.mxu0 %v3480_v28  ;;  %1760 = vmatprep.mubr.bf16.mxu1 %v4084_v31  ;;  %v4142_v28 = vpack.c.bf16 %v333_v22, %v327_v21  ;;  %v3571_v21 = vld [vmem:[#allocation4 + $0x378] ss:$12 sps:$4 sm:$0xff]   ;;  %v3576_v22 = vld [vmem:[#allocation4 + $0x394] ss:$12 sps:$4 sm:$0xff]  }
  0xbf   : > { %1488 = vmatprep.subr.bf16.mxu0 %v3487_v30  ;;  %1427 = vmatprep.mubr.bf16.mxu0 %v4044_v43  ;;  %v3495_v43 = vld [vmem:[#allocation4 + $0x1c8] ss:$12 sps:$4 sm:$0xff]  }
  0xc0   : > { %v3552_v30 = vld [vmem:[#allocation4 + $0x368] ss:$12 sps:$4 sm:$0xff]  }
  0xc2   : > { %1489 = vmatpush1.bf16.msra.mxu0 %v3485_v32  ;;  %v3530_v32 = vld [vmem:[#allocation4 + $0x2a4] ss:$12 sps:$4 sm:$0xff]  }
  0xc3   : > { %1490 = vmatprep.subr.bf16.mxu0 %v3492_v34  ;;  %v3556_v34 = vld [vmem:[#allocation4 + $0x440] ss:$12 sps:$4 sm:$0xff]  }
  0xc5   : > { %1428 = vmatmul.mubr.bf16.gmra.mrb[4].mxu0 %v4052_v50  ;;  %1761 = vmatmul.mubr.bf16.gmra.mrb[20].mxu1 %v4093_v42  ;;  %v4104_v50 = vpack.c.bf16 %v360_v47, %v360_v47  ;;  %v338_v47 = vld [vmem:[%s4026_s6 + $0x190] sm:$0xff] }
  0xc6   : > { %1491 = vmatpush1.bf16.msra.mxu0 %v3490_v40  ;;  %1768 = vmatprep.mubr.bf16.mxu1 %v4095_v45  ;;  %v3535_v40 = vld [vmem:[#allocation4 + $0x2bc] ss:$12 sps:$4 sm:$0xff]  }
  0xc7   : > { %1492 = vmatprep.subr.bf16.mxu0 %v3497_v44  ;;  %1437 = vmatprep.mubr.bf16.mxu0 %v4054_v53  ;;  %v3531_v53 = vld [vmem:[#allocation4 + $0x3c8] ss:$12 sps:$4 sm:$0xff]   ;;  %v3562_v44 = vld [vmem:[#allocation4 + $0x398] ss:$12 sps:$4 sm:$0xff]  }
  0xc8   : > { %3007 = vmatprep.subr.bf16.mxu1 %v3531_v53  ;;  %v356_v53 = vld [vmem:[%s4026_s6 + $0x220] sm:$0xff] }
  0xca   : > { %1493 = vmatpush1.bf16.msra.mxu0 %v3495_v43  ;;  %v3533_v43 = vld [vmem:[#allocation4 + $0x2b8] ss:$12 sps:$4 sm:$0xff]  }
  0xcb   : > { %1494 = vmatprep.subr.bf16.mxu0 %v3502_v46  ;;  %v3566_v46 = vld [vmem:[#allocation4 + $0x470] ss:$12 sps:$4 sm:$0xff]  }
  0xcd   : > { %1438 = vmatmul.mubr.bf16.gmra.mrb[8].mxu0 %v4062_v0  ;;  %1769 = vmatmul.mubr.bf16.gmra.mrb[24].mxu1 %v4104_v50  ;;  %v4118_v0 = vpack.c.bf16 %v309_v60, %v303_v59  ;;  %v350_v59 = vld [vmem:[%s4026_s6 + $0x1f0] sm:$0xff]  ;;  %v363_v60 = vld [vmem:[%s4026_s6 + $0x258] sm:$0xff] }
  0xce   : > { %1495 = vmatpush1.bf16.msra.mxu0 %v3500_v51  ;;  %1808 = vmatprep.mubr.bf16.mxu1 %v4106_v54  ;;  %v357_v51 = vld [vmem:[%s4026_s6 + $0x228] sm:$0xff] }
  0xcf   : > { %1496 = vmatprep.subr.bf16.mxu0 %v3507_v52  ;;  %1447 = vmatprep.mubr.bf16.mxu0 %v4064_v3  ;;  %v308_v3 = vld [vmem:[%s4026_s6 + $0xa0] sm:$0xff]  ;;  %v4166_v57 = vpack.c.bf16 %v357_v51, %v351_v49 }
  0xd0   : > { %v4128_v12 = vpack.c.bf16 %v308_v3, %v302_v5  ;;  %v3567_v52 = vld [vmem:[#allocation4 + $0x3b0] ss:$12 sps:$4 sm:$0xff]   ;;  %v3560_v5 = vld [vmem:[#allocation4 + $0x334] ss:$12 sps:$4 sm:$0xff]  }
  0xd1   : > { %v293_v3 = vld [vmem:[%s4026_s6 + $0x28] sm:$0xff] }
  0xd2   : > { %1497 = vmatpush1.bf16.msra.mxu0 %v3505_v55  ;;  %v4164_v55 = vpack.c.bf16 %v344_v48, %v338_v47  ;;  %v3591_v48 = vld [vmem:[#allocation4 + $0x40c] ss:$12 sps:$4 sm:$0xff]   ;;  %v3589_v51 = vld [vmem:[#allocation4 + $0x408] ss:$12 sps:$4 sm:$0xff]  }
  0xd3   : > { %1498 = vmatprep.subr.bf16.mxu0 %v3512_v56  ;;  %v3545_v56 = vld [vmem:[#allocation4 + $0x2ec] ss:$12 sps:$4 sm:$0xff]  }
  0xd5   : > { %1448 = vmatmul.mubr.bf16.gmra.mrb[12].mxu0 %v4072_v14  ;;  %1809 = vmatmul.mubr.bf16.vlgmr.msra.gmra.mrb[28].mxu1 %v4116_v62  ;;  %v4130_v14 = vpack.c.bf16 %v321_v8, %v315_v7  ;;  %v299_v7 = vld [vmem:[%s4026_s6 + $0x58] sm:$0xff] }
  0xd6   : > { %1499 = vmatpush1.bf16.msra.mxu0 %v3510_v61  ;;  %1816 = vmatprep.mubr.bf16.mxu1 %v4118_v0  ;;  %v3548_v61 = vld [vmem:[#allocation4 + $0x300] ss:$12 sps:$4 sm:$0xff]   ;;  %v3558_v8 = vld [vmem:[#allocation4 + $0x330] ss:$12 sps:$4 sm:$0xff]  }
  0xd7   : > { %1500 = vmatprep.subr.bf16.mxu0 %v3515_v63  ;;  %1457 = vmatprep.mubr.bf16.mxu0 %v4074_v17  ;;  %v314_v17 = vld [vmem:[%s4026_s6 + $0xd0] sm:$0xff]  ;;  %v4173_v63 = vpack.c.bf16 %v356_v53, %v350_v59  ;;  %v3597_v59 = vld [vmem:[#allocation4 + $0x43c] ss:$12 sps:$4 sm:$0xff]  }
  0xd8   : > { %3008 = vmatpush3.bf16.msra.mxu1 %v3532_v2  ;;  %v4140_v26 = vpack.c.bf16 %v320_v20, %v314_v17  ;;  %v4175_v2 = vpack.c.bf16 %v363_v60, %v363_v60  ;;  %v3568_v17 = vld [vmem:[#allocation4 + $0x360] ss:$12 sps:$4 sm:$0xff]   ;;  %v3595_v60 = vld [vmem:[#allocation4 + $0x438] ss:$12 sps:$4 sm:$0xff]  }
  0xd9   : > { %3009 = vmatprep.subr.bf16.mxu1 %v3536_v6  ;;  %v362_v6 = vld [vmem:[%s4026_s6 + $0x250] sm:$0xff] }
  0xda   : > { %1501 = vmatpush1.bf16.msra.mxu0 %v3513_v1  ;;  %v3555_v1 = vld [vmem:[#allocation4 + $0x31c] ss:$12 sps:$4 sm:$0xff]  }
  0xdb   : > { %1502 = vmatprep.subr.bf16.mxu0 %v3518_v4  ;;  %v3553_v4 = vld [vmem:[#allocation4 + $0x318] ss:$12 sps:$4 sm:$0xff]  }
  0xdc   : > { %3010 = vmatpush3.bf16.msra.mxu1 %v3537_v9  ;;  %v3565_v9 = vld [vmem:[#allocation4 + $0x34c] ss:$12 sps:$4 sm:$0xff]  }
  0xdd   : > { %1458 = vmatmul.mubr.bf16.gmra.mrb[16].mxu0 %v4082_v29  ;;  %3011 = vmatprep.subr.bf16.mxu1 %v3541_v10  ;;  %v3525_v29 = vld [vmem:[#allocation4 + $0x288] ss:$12 sps:$4 sm:$0xff]   ;;  %v4186_v10 = vpack.c.bf16 %v299_v7, %v293_v3 }
  0xde   : > { %1817 = vmatmul.mubr.bf16.gmra.mrb[32].mxu1 %v4128_v12  ;;  %1503 = vmatpush1.bf16.msra.mxu0 %v3516_v11  ;;  %v3563_v11 = vld [vmem:[#allocation4 + $0x348] ss:$12 sps:$4 sm:$0xff]  }
  0xdf   : > { %1504 = vmatprep.subr.bf16.mxu0 %v3521_v13  ;;  %1824 = vmatprep.mubr.bf16.mxu1 %v4130_v14  ;;  %v3570_v13 = vld [vmem:[#allocation4 + $0x364] ss:$12 sps:$4 sm:$0xff]   ;;  %v3601_v7 = vld [vmem:[#allocation4 + $0x468] ss:$12 sps:$4 sm:$0xff]  }
  0xe0   : > { %1467 = vmatprep.mubr.bf16.mxu0 %v4084_v31  ;;  %3012 = vmatpush3.bf16.msra.mxu1 %v3542_v16  ;;  %v326_v31 = vld [vmem:[%s4026_s6 + $0x130] sm:$0xff] }
  0xe1   : > { %3013 = vmatprep.subr.bf16.mxu1 %v3546_v19  ;;  %v4152_v41 = vpack.c.bf16 %v332_v33, %v326_v31  ;;  %v298_v16 = vld [vmem:[%s4026_s6 + $0x50] sm:$0xff]  ;;  %v3573_v19 = vld [vmem:[#allocation4 + $0x37c] ss:$12 sps:$4 sm:$0xff]  }
  0xe2   : > { %1505 = vmatpush1.bf16.msra.mxu0 %v3519_v15  ;;  %v292_v15 = vld [vmem:[%s4026_s6 + $0x20] sm:$0xff]  ;;  %v322_v33 = vld [vmem:[%s4026_s6 + $0x110] sm:$0xff] }
  0xe3   : > { %1506 = vmatprep.subr.bf16.mxu0 %v3524_v18  ;;  %v311_v18 = vld [vmem:[%s4026_s6 + $0xb8] sm:$0xff]  ;;  %v3582_v31 = vld [vmem:[#allocation4 + $0x3c4] ss:$12 sps:$4 sm:$0xff]  }
  0xe4   : > { %3014 = vmatpush3.bf16.msra.mxu1 %v3547_v23  ;;  %v304_v23 = vld [vmem:[%s4026_s6 + $0x80] sm:$0xff] }
  0xe5   : > { %1468 = vmatmul.mubr.bf16.gmra.mrb[20].mxu0 %v4093_v42  ;;  %3015 = vmatprep.subr.bf16.mxu1 %v3551_v24  ;;  %v4154_v42 = vpack.c.bf16 %v345_v36, %v339_v35  ;;  %v310_v24 = vld [vmem:[%s4026_s6 + $0xb0] sm:$0xff]  ;;  %v335_v35 = vld [vmem:[%s4026_s6 + $0x178] sm:$0xff] }
  0xe6   : > { %1825 = vmatmul.mubr.bf16.gmra.mrb[36].mxu1 %v4140_v26  ;;  %1507 = vmatpush1.bf16.msra.mxu0 %v3522_v25  ;;  %v317_v25 = vld [vmem:[%s4026_s6 + $0xe8] sm:$0xff] }
  0xe7   : > { %1508 = vmatprep.subr.bf16.mxu0 %v3527_v27  ;;  %1832 = vmatprep.mubr.bf16.mxu1 %v4142_v28  ;;  %v323_v27 = vld [vmem:[%s4026_s6 + $0x118] sm:$0xff] }
  0xe8   : > { %1477 = vmatprep.mubr.bf16.mxu0 %v4095_v45  ;;  %3016 = vmatpush3.bf16.msra.mxu1 %v3552_v30  ;;  %v3540_v45 = vld [vmem:[#allocation4 + $0x2d4] ss:$12 sps:$4 sm:$0xff]   ;;  %v4210_v30 = vpack.c.bf16 %v323_v27, %v317_v25 }
  0xe9   : > { %3017 = vmatprep.subr.bf16.mxu1 %v3556_v34  ;;  %v329_v34 = vld [vmem:[%s4026_s6 + $0x148] sm:$0xff] }
  0xea   : > { %1509 = vmatpush1.bf16.msra.mxu0 %v3525_v29  ;;  %v3579_v29 = vld [vmem:[#allocation4 + $0x3ac] ss:$12 sps:$4 sm:$0xff]  }
  0xeb   : > { %1510 = vmatprep.subr.bf16.mxu0 %v3530_v32  ;;  %v3577_v32 = vld [vmem:[#allocation4 + $0x3a8] ss:$12 sps:$4 sm:$0xff]   ;;  %v3580_v36 = vld [vmem:[#allocation4 + $0x3c0] ss:$12 sps:$4 sm:$0xff]  }
  0xec   : > { %3018 = vmatpush3.bf16.msra.mxu1 %v3557_v37 }
  0xed   : > { %1478 = vmatmul.mubr.bf16.gmra.mrb[24].mxu0 %v4104_v50  ;;  %3019 = vmatprep.subr.bf16.mxu1 %v3561_v38  ;;  %v3538_v50 = vld [vmem:[#allocation4 + $0x2d0] ss:$12 sps:$4 sm:$0xff]  }
  0xee   : > { %1833 = vmatmul.mubr.bf16.gmra.mrb[40].mxu1 %v4152_v41  ;;  %1511 = vmatpush1.bf16.msra.mxu0 %v3528_v39  ;;  %v3585_v38 = vld [vmem:[#allocation4 + $0x3dc] ss:$12 sps:$4 sm:$0xff]   ;;  %v4222_v39 = vpack.c.bf16 %v335_v35, %v329_v34 }
  0xef   : > { %1512 = vmatprep.subr.bf16.mxu0 %v3535_v40  ;;  %1840 = vmatprep.mubr.bf16.mxu1 %v4154_v42  ;;  %v3588_v40 = vld [vmem:[#allocation4 + $0x3f4] ss:$12 sps:$4 sm:$0xff]  }
  0xf0   : > { %1518 = vmatprep.mubr.bf16.mxu0 %v4106_v54  ;;  %3020 = vmatpush3.bf16.msra.mxu1 %v3562_v44  ;;  %v3550_v54 = vld [vmem:[#allocation4 + $0x304] ss:$12 sps:$4 sm:$0xff]  }
  0xf1   : > { %3021 = vmatprep.subr.bf16.mxu1 %v3566_v46  ;;  %v334_v44 = vld [vmem:[%s4026_s6 + $0x170] sm:$0xff] }
  0xf2   : > { %1513 = vmatpush1.bf16.msra.mxu0 %v3533_v43  ;;  %v341_v43 = vld [vmem:[%s4026_s6 + $0x1a8] sm:$0xff] }
  0xf3   : > { %1514 = vmatprep.subr.bf16.mxu0 %v3540_v45  ;;  %v347_v45 = vld [vmem:[%s4026_s6 + $0x1d8] sm:$0xff] }
  0xf4   : > { %3022 = vmatpush3.bf16.msra.mxu1 %v3567_v52  ;;  %v3586_v46 = vld [vmem:[#allocation4 + $0x3f0] ss:$12 sps:$4 sm:$0xff]   ;;  %v4234_v49 = vpack.c.bf16 %v347_v45, %v341_v43  ;;  %v602_v45 = vlaneseq }
  0xf5   : > { %v3594_v52 = vld [vmem:[#allocation4 + $0x424] ss:$12 sps:$4 sm:$0xff]  }
  0xf6   : > { %1841 = vmatmul.mubr.bf16.gmra.mrb[44].mxu1 %v4164_v55  ;;  %1515 = vmatpush1.bf16.msra.mxu0 %v3538_v50  ;;  %v340_v50 = vld [vmem:[%s4026_s6 + $0x1a0] sm:$0xff] }
  0xf7   : > { %1516 = vmatprep.subr.bf16.mxu0 %v3545_v56  ;;  %1848 = vmatprep.mubr.bf16.mxu1 %v4166_v57  ;;  %v353_v56 = vld [vmem:[%s4026_s6 + $0x208] sm:$0xff] }
  0xfa   : > { %1517 = vmatpush1.bf16.msra.mxu0 %v3543_v58  ;;  %v3592_v58 = vld [vmem:[#allocation4 + $0x420] ss:$12 sps:$4 sm:$0xff]  }
  0xfb   : > { %1587 = vmatprep.subr.bf16.mxu0 %v3550_v54 }
  0xfd   : > { %1519 = vmatmul.mubr.bf16.vlgmr.msra.gmra.mrb[0].mxu0 %v4116_v62  ;;  %v4184_v62 = vpack.c.bf16 %v362_v6, %v362_v6  ;;  %v3603_v6 = vld [vmem:[#allocation4 + $0x46c] ss:$12 sps:$4 sm:$0xff]  }
  0xfe   : > { %1849 = vmatmul.mubr.bf16.gmra.mrb[48].mxu1 %v4173_v63  ;;  %1588 = vmatpush1.bf16.msra.mxu0 %v3548_v61  ;;  %v3600_v61 = vld [vmem:[#allocation4 + $0x454] ss:$12 sps:$4 sm:$0xff]  }
  0xff   : > { %1589 = vmatprep.subr.bf16.mxu0 %v3555_v1  ;;  %1856 = vmatprep.mubr.bf16.mxu1 %v4175_v2  ;;  %v358_v1 = vld [vmem:[%s4026_s6 + $0x230] sm:$0xff] }
 0x100   : > { %1528 = vmatprep.mubr.bf16.mxu0 %v4118_v0  ;;  %v305_v0 = vld [vmem:[%s4026_s6 + $0x88] sm:$0xff] }
 0x101   : > { %v4198_v20 = vpack.c.bf16 %v311_v18, %v305_v0  ;;  %v4279_v0 = vld [vmem:[#allocation6 + $0xa8] sm:$0xff]   ;;  %v4283_v18 = vld [vmem:[#allocation6 + $0xb0] sm:$0xff]  }
 0x102   : > { %1590 = vmatpush1.bf16.msra.mxu0 %v3553_v4  ;;  %v3598_v4 = vld [vmem:[#allocation4 + $0x450] ss:$12 sps:$4 sm:$0xff]  }
 0x103   : > { %1591 = vmatprep.subr.bf16.mxu0 %v3560_v5 }
 0x105   : > { %1529 = vmatmul.mubr.bf16.gmra.mrb[4].mxu0 %v4128_v12  ;;  %v4196_v12 = vpack.c.bf16 %v298_v16, %v292_v15  ;;  %v4270_v15 = vld [vmem:[#allocation6 + $0x98] sm:$0xff]   ;;  %v4275_v16 = vld [vmem:[#allocation6 + $0xa0] sm:$0xff]  }
 0x106   : > { %1857 = vmatmul.mubr.bf16.gmra.mrb[52].mxu1 %v4184_v62  ;;  %1592 = vmatpush1.bf16.msra.mxu0 %v3558_v8  ;;  %v364_v8 = vld [vmem:[%s4026_s6 + $0x260] sm:$0xff] }
 0x107   : > { %1593 = vmatprep.subr.bf16.mxu0 %v3565_v9  ;;  %1896 = vmatprep.mubr.bf16.mxu1 %v4186_v10  ;;  %v4252_v9 = vld [vmem:[#allocation6 + $0x80] sm:$0xff]  }
 0x108   : > { %1538 = vmatprep.mubr.bf16.mxu0 %v4130_v14  ;;  %v3574_v14 = vld [vmem:[#allocation4 + $0x390] ss:$12 sps:$4 sm:$0xff]  }
 0x10a   : > { %1594 = vmatpush1.bf16.msra.mxu0 %v3563_v11  ;;  %v4259_v11 = vld [vmem:[#allocation6 + $0x88] sm:$0xff]  }
 0x10b   : > { %1595 = vmatprep.subr.bf16.mxu0 %v3570_v13  ;;  %v4264_v13 = vld [vmem:[#allocation6 + $0x90] sm:$0xff]  }
 0x10d   : > { %1539 = vmatmul.mubr.bf16.gmra.mrb[8].mxu0 %v4140_v26  ;;  %v4208_v26 = vpack.c.bf16 %v310_v24, %v304_v23  ;;  %v3616_v23 = vld [vmem:[#allocation6 + $0x50] sm:$0xff]  }
 0x10e   : > { %1897 = vmatmul.mubr.bf16.vlgmr.msra.gmra.mrb[56].mxu1 %v4196_v12  ;;  %1596 = vmatpush1.bf16.msra.mxu0 %v3568_v17  ;;  %v3610_v17 = vld [vmem:[#allocation6 + $0x40] sm:$0xff]  }
 0x10f   : > { %1597 = vmatprep.subr.bf16.mxu0 %v3573_v19  ;;  %1904 = vmatprep.mubr.bf16.mxu1 %v4198_v20  ;;  %v4287_v19 = vld [vmem:[#allocation6 + $0xb8] sm:$0xff]  }
 0x110   : > { %1548 = vmatprep.mubr.bf16.mxu0 %v4142_v28  ;;  %v316_v28 = vld [vmem:[%s4026_s6 + $0xe0] sm:$0xff]  ;;  %3065 = vmatprep.subr.bf16.mxu1 %v3610_v17 }
 0x111   : > { %v4220_v37 = vpack.c.bf16 %v322_v33, %v316_v28 }
 0x112   : > { %1598 = vmatpush1.bf16.msra.mxu0 %v3571_v21  ;;  %v3615_v21 = vld [vmem:[#allocation6 + $0x8] sm:$0xff]  }
 0x113   : > { %1599 = vmatprep.subr.bf16.mxu0 %v3576_v22 }
 0x115   : > { %1549 = vmatmul.mubr.bf16.gmra.mrb[12].mxu0 %v4152_v41  ;;  %v3583_v41 = vld [vmem:[#allocation4 + $0x3d8] ss:$12 sps:$4 sm:$0xff]  }
 0x116   : > { %1905 = vmatmul.mubr.bf16.gmra.mrb[60].mxu1 %v4208_v26  ;;  %1600 = vmatpush1.bf16.msra.mxu0 %v3574_v14 }
 0x117   : > { %1601 = vmatprep.subr.bf16.mxu0 %v3579_v29  ;;  %1912 = vmatprep.mubr.bf16.mxu1 %v4210_v30 }
 0x118   : > { %1558 = vmatprep.mubr.bf16.mxu0 %v4154_v42  ;;  %v328_v42 = vld [vmem:[%s4026_s6 + $0x140] sm:$0xff] }
 0x119   : > { %v4232_v47 = vpack.c.bf16 %v334_v44, %v328_v42 }
 0x11a   : > { %1602 = vmatpush1.bf16.msra.mxu0 %v3577_v32  ;;  %v3618_v32 = vld [vmem:[#allocation6 + $0x58] sm:$0xff]  }
 0x11b   : > { %1603 = vmatprep.subr.bf16.mxu0 %v3582_v31  ;;  %v3619_v31 = vld [vmem:[#allocation6 + $0x18] sm:$0xff]  }
 0x11d   : > { %1559 = vmatmul.mubr.bf16.gmra.mrb[16].mxu0 %v4164_v55  ;;  %v346_v55 = vld [vmem:[%s4026_s6 + $0x1d0] sm:$0xff] }
 0x11e   : > { %1913 = vmatmul.mubr.bf16.gmra.mrb[64].mxu1 %v4220_v37  ;;  %1604 = vmatpush1.bf16.msra.mxu0 %v3580_v36  ;;  %v394_v54 = vpack.c.bf16 %v346_v55, %v340_v50  ;;  %v3623_v50 = vld [vmem:[#allocation6 + $0x28] sm:$0xff]  }
 0x11f   : > { %1605 = vmatprep.subr.bf16.mxu0 %v3585_v38  ;;  %1920 = vmatprep.mubr.bf16.mxu1 %v4222_v39  ;;  %v3620_v38 = vld [vmem:[#allocation6 + $0x60] sm:$0xff]  }
 0x120   : > { %1568 = vmatprep.mubr.bf16.mxu0 %v4166_v57  ;;  %v359_v57 = vld [vmem:[%s4026_s6 + $0x238] sm:$0xff] }
 0x121   : > { %v401_v53 = vpack.c.bf16 %v359_v57, %v353_v56 }
 0x122   : > { %1606 = vmatpush1.bf16.msra.mxu0 %v3583_v41 }
 0x123   : > { %1607 = vmatprep.subr.bf16.mxu0 %v3588_v40 }
 0x125   : > { %1569 = vmatmul.mubr.bf16.gmra.mrb[20].mxu0 %v4173_v63  ;;  %v352_v63 = vld [vmem:[%s4026_s6 + $0x200] sm:$0xff] }
 0x126   : > { %1921 = vmatmul.mubr.bf16.gmra.mrb[68].mxu1 %v4232_v47  ;;  %1608 = vmatpush1.bf16.msra.mxu0 %v3586_v46  ;;  %v400_v5 = vpack.c.bf16 %v358_v1, %v352_v63 }
 0x127   : > { %1609 = vmatprep.subr.bf16.mxu0 %v3591_v48  ;;  %1928 = vmatprep.mubr.bf16.mxu1 %v4234_v49  ;;  %v4304_v48 = vshrl.u32 %v602_v45, 7 }
 0x128   : > { %1578 = vmatprep.mubr.bf16.mxu0 %v4175_v2  ;;  %v365_v2 = vld [vmem:[%s4026_s6 + $0x268] sm:$0xff] }
 0x129   : > { %v407_v3 = vpack.c.bf16 %v365_v2, %v365_v2  ;;  %v612_v57 = vsub.s32 2, %v4304_v48 }
 0x12a   : > { %1610 = vmatpush1.bf16.msra.mxu0 %v3589_v51 }
 0x12b   : > { %1611 = vmatprep.subr.bf16.mxu0 %v3594_v52  ;;  %v3622_v52 = vld [vmem:[#allocation6 + $0x68] sm:$0xff]  }
 0x12d   : > { %1579 = vmatmul.mubr.bf16.gmra.mrb[24].mxu0 %v4184_v62  ;;  %v406_v62 = vpack.c.bf16 %v364_v8, %v364_v8 }
 0x12e   : > { %1929 = vmatmul.mubr.bf16.gmra.mrb[72].mxu1 %v394_v54  ;;  %1612 = vmatpush1.bf16.msra.mxu0 %v3592_v58  ;;  %v4314_v58 = vld [vmem:[%s4573_s2] sm:$0x7] }
 0x12f   : > { %1613 = vmatprep.subr.bf16.mxu0 %v3597_v59  ;;  %1936 = vmatprep.mubr.bf16.mxu1 %v401_v53  ;;  %v3624_v59 = vld [vmem:[#allocation6 + $0x70] sm:$0xff]  }
 0x130   : > { %1619 = vmatprep.mubr.bf16.mxu0 %v4186_v10  ;;  %v3829_v10 = vmov 0.0  }
 0x132   : > { %1614 = vmatpush1.bf16.msra.mxu0 %v3595_v60 }
 0x133   : > { %1615 = vmatprep.subr.bf16.mxu0 %v3600_v61  ;;  %v613_v61 = vrot.slane %v4314_v58, %v612_v57 }
 0x136   : > { %1937 = vmatmul.mubr.bf16.gmra.mrb[76].mxu1 %v400_v5  ;;  %1616 = vmatpush1.bf16.msra.mxu0 %v3598_v4 }
 0x137   : > { %1617 = vmatprep.subr.bf16.mxu0 %v3603_v6  ;;  %1944 = vmatprep.mubr.bf16.mxu1 %v407_v3  ;;  %v3626_v6 = vld [vmem:[#allocation6 + $0x78] sm:$0xff]  }
 0x13a   : > { %1618 = vmatpush1.bf16.msra.mxu0 %v3601_v7  ;;  %v3627_v7 = vld [vmem:[#allocation6 + $0x38] sm:$0xff]  }
 0x13b   : > { %3138 = vmatprep.subr.bf16.mxu0 %v3829_v10 }
 0x13d   : > { %1620 = vmatmul.mubr.bf16.vlgmr.msra.gmra.mrb[0].mxu0 %v4196_v12  ;;  %v3611_v12 = vld [vmem:[#allocation6] sm:$0xff]  }
 0x13e   : > { %1945 = vmatmul.mubr.bf16.gmra.mrb[80].mxu1 %v406_v62  ;;  %1629 = vmatprep.mubr.bf16.mxu0 %v4198_v20  ;;  %v3613_v20 = vld [vmem:[#allocation6 + $0x48] sm:$0xff]  }
 0x13f   : > { %3139 = vmatpush3.bf16.msra.mxu0 %v4252_v9  ;;  %3066 = vmatpush3.bf16.msra.mxu1 %v3611_v12 }
 0x140   : > { %3140 = vmatprep.subr.bf16.mxu0 %v3829_v10  ;;  %3067 = vmatprep.subr.bf16.mxu1 %v3613_v20 }
 0x143   : > { %3141 = vmatpush3.bf16.msra.mxu0 %v4259_v11  ;;  %3068 = vmatpush3.bf16.msra.mxu1 %v3615_v21 }
 0x144   : > { %3142 = vmatprep.subr.bf16.mxu0 %v3829_v10  ;;  %3069 = vmatprep.subr.bf16.mxu1 %v3616_v23 }
 0x145   : > { %1630 = vmatmul.mubr.bf16.gmra.mrb[4].mxu0 %v4208_v26  ;;  %v3617_v26 = vld [vmem:[#allocation6 + $0x10] sm:$0xff]  }
 0x146   : > { %1639 = vmatprep.mubr.bf16.mxu0 %v4210_v30 }
 0x147   : > { %3143 = vmatpush3.bf16.msra.mxu0 %v4264_v13  ;;  %3070 = vmatpush3.bf16.msra.mxu1 %v3617_v26 }
 0x148   : > { %3144 = vmatprep.subr.bf16.mxu0 %v3829_v10  ;;  %3071 = vmatprep.subr.bf16.mxu1 %v3618_v32 }
 0x14b   : > { %3145 = vmatpush3.bf16.msra.mxu0 %v4270_v15  ;;  %3072 = vmatpush3.bf16.msra.mxu1 %v3619_v31 }
 0x14c   : > { %3146 = vmatprep.subr.bf16.mxu0 %v3829_v10  ;;  %3073 = vmatprep.subr.bf16.mxu1 %v3620_v38 }
 0x14d   : > { %1640 = vmatmul.mubr.bf16.gmra.mrb[8].mxu0 %v4220_v37 }
 0x14e   : > { %1649 = vmatprep.mubr.bf16.mxu0 %v4222_v39  ;;  %v3621_v39 = vld [vmem:[#allocation6 + $0x20] sm:$0xff]  }
 0x14f   : > { %3147 = vmatpush3.bf16.msra.mxu0 %v4275_v16  ;;  %3074 = vmatpush3.bf16.msra.mxu1 %v3621_v39 }
 0x150   : > { %3148 = vmatprep.subr.bf16.mxu0 %v3829_v10  ;;  %3075 = vmatprep.subr.bf16.mxu1 %v3622_v52 }
 0x153   : > { %3149 = vmatpush3.bf16.msra.mxu0 %v4279_v0  ;;  %3076 = vmatpush3.bf16.msra.mxu1 %v3623_v50 }
 0x154   : > { %3150 = vmatprep.subr.bf16.mxu0 %v3829_v10  ;;  %3077 = vmatprep.subr.bf16.mxu1 %v3624_v59 }
 0x155   : > { %1650 = vmatmul.mubr.bf16.gmra.mrb[12].mxu0 %v4232_v47 }
 0x156   : > { %1659 = vmatprep.mubr.bf16.mxu0 %v4234_v49 }
 0x157   : > { %3151 = vmatpush3.bf16.msra.mxu0 %v4283_v18 }
 0x158   : > { %3152 = vmatprep.subr.bf16.mxu0 %v3829_v10 }
 0x15b   : > { %3153 = vmatpush3.bf16.msra.mxu0 %v4287_v19 }
 0x15d   : > { %1660 = vmatmul.mubr.bf16.gmra.mrb[16].mxu0 %v394_v54 }
 0x15e   : > { %1669 = vmatprep.mubr.bf16.mxu0 %v401_v53  ;;  %v3625_v53 = vld [vmem:[#allocation6 + $0x30] sm:$0xff]  }
 0x15f   : > { %3078 = vmatpush3.bf16.msra.mxu1 %v3625_v53 }
 0x160   : > { %3079 = vmatprep.subr.bf16.mxu1 %v3626_v6 }
 0x163   : > { %3080 = vmatpush3.bf16.msra.mxu1 %v3627_v7 }
 0x164   : > { %3182 = vmatprep.subr.bf16.mxu1 %v3829_v10 }
 0x165   : > { %1670 = vmatmul.mubr.bf16.gmra.mrb[20].mxu0 %v400_v5 }
 0x166   : > { %1679 = vmatprep.mubr.bf16.mxu0 %v407_v3 }
 0x16d   : > { %1680 = vmatmul.mubr.bf16.gmra.mrb[24].mxu0 %v406_v62 }
 0x16e   : > { %3154 = vmatprep.mubr.msk.bf16.mxu0 %vm3830_vm0, %v3829_v10 }
 0x170   : > { %v2907_v22 = vpop.f32.mrb[0].mxu1 }
 0x171   : > { %v2908_v24 = vpop.f32.mrb[1].mxu1 }
 0x172   : > { %v4292_v25 = vadd.f32 %v2908_v24, %v2907_v22  ;;  %v2910_v27 = vpop.f32.mrb[2].mxu1 }
 0x173   : > { %v2911_v14 = vpop.f32.mrb[3].mxu1 }
 0x174   : > { %v4294_v29 = vadd.f32 %v2911_v14, %v2910_v27  ;;  %v1723_v31 = vadd.f32 %v4292_v25, %v613_v61 }
 0x178   : > { %v2913_v30 = vpop.f32.mrb[4].mxu1 }
 0x179   : > { %v2914_v28 = vpop.f32.mrb[5].mxu1 }
 0x17a   : > { %v4296_v33 = vadd.f32 %v2914_v28, %v2913_v30  ;;  %v2916_v34 = vpop.f32.mrb[6].mxu1 }
 0x17b   : > { %v2917_v35 = vpop.f32.mrb[7].mxu1 }
 0x17c   : > { %v4298_v36 = vadd.f32 %v2917_v35, %v2916_v34  ;;  %v1726_v35 = vadd.f32 %v4294_v29, %v613_v61  ;;  %v1731_v45 = vadd.f32 %v4296_v33, %v613_v61 }
 0x180   : > { %v2919_v37 = vpop.f32.mrb[8].mxu1 }
 0x181   : > { %v2920_v41 = vpop.f32.mrb[9].mxu1 }
 0x182   : > { %v4300_v40 = vadd.f32 %v2920_v41, %v2919_v37  ;;  %v2922_v42 = vpop.f32.mrb[10].mxu1 }
 0x183   : > { %v2923_v44 = vpop.f32.mrb[11].mxu1 }
 0x184   : > { %v4302_v43 = vadd.f32 %v2923_v44, %v2922_v42  ;;  %v1739_v29 = vadd.f32 %v4300_v40, %v613_v61 }
 0x188   : > { %v2925_v46 = vpop.f32.mrb[12].mxu1 }
 0x189   : > { %v2926_v47 = vpop.f32.mrb[13].mxu1 }
 0x18a   : > { %v4306_v49 = vadd.f32 %v2926_v47, %v2925_v46  ;;  %v2928_v51 = vpop.f32.mrb[14].mxu1 }
 0x18b   : > { %v2929_v55 = vpop.f32.mrb[15].mxu1 }
 0x18c   : > { %v4308_v56 = vadd.f32 %v2929_v55, %v2928_v51  ;;  %v1734_v51 = vadd.f32 %v4298_v36, %v613_v61  ;;  %v1747_v6 = vadd.f32 %v4306_v49, %v613_v61 }
 0x190   : > { %v2931_v54 = vpop.f32.mrb[16].mxu1 }
 0x191   : > { %v2932_v60 = vpop.f32.mrb[17].mxu1 }
 0x192   : > { %v2933_v63 = vadd.f32 %v2932_v60, %v2931_v54  ;;  %v2934_v1 = vpop.f32.mrb[18].mxu1  ;;  %v1742_v60 = vadd.f32 %v4302_v43, %v613_v61 }
 0x193   : > { %v2935_v2 = vpop.f32.mrb[19].mxu1 }
 0x194   : > { %v4317_v4 = vadd.f32 %v2933_v63, %v613_v61  ;;  %v2936_v5 = vadd.f32 %v2935_v2, %v2934_v1 }
 0x196   : > { %v4319_v3 = vadd.f32 %v2936_v5, %v613_v61 }
 0x198   : > { %v2937_v8 = vpop.f32.mrb[20].mxu1 }
 0x199   : > { %v2938_v62 = vpop.f32.mrb[21].mxu1 }
 0x19a   : > { %v2939_v17 = vadd.f32 %v2938_v62, %v2937_v8  ;;  %v2940_v12 = vpop.f32.mrb[22].mxu1  ;;  %v1750_v62 = vadd.f32 %v4308_v56, %v613_v61 }
 0x19b   : > { %v2941_v20 = vpop.f32.mrb[23].mxu1 }
 0x19c   : > { %v1763_v21 = vadd.f32 %v2939_v17, %v613_v61  ;;  %v2942_v22 = vadd.f32 %v2941_v20, %v2940_v12 }
 0x19e   : > { %v1766_v23 = vadd.f32 %v2942_v22, %v613_v61 }
 0x1a0   : > { %v2943_v24 = vpop.f32.mrb[24].mxu1 }
 0x1a1   : > { %v2944_v27 = vpop.f32.mrb[25].mxu1 }
 0x1a2   : > { %v2945_v14 = vadd.f32 %v2944_v27, %v2943_v24  ;;  %v2946_v26 = vpop.f32.mrb[26].mxu1 }
 0x1a3   : > { %v2947_v30 = vpop.f32.mrb[27].mxu1 }
 0x1a4   : > { %v1771_v32 = vadd.f32 %v2945_v14, %v613_v61 }
 0x1a8   : > { %v2965_v28 = vpop.f32.mrb[28].mxu1 }
 0x1a9   : > { %v2966_v34 = vpop.f32.mrb[29].mxu1 }
 0x1aa   : > { %v2967_v37 = vadd.f32 %v2966_v34, %v2965_v28  ;;  %v2968_v38 = vpop.f32.mrb[30].mxu1 }
 0x1ab   : > { %v2969_v39 = vpop.f32.mrb[31].mxu1 }
 0x1ac   : > { %v1811_v41 = vadd.f32 %v2967_v37, %v1723_v31  ;;  %v2970_v42 = vadd.f32 %v2969_v39, %v2968_v38 }
 0x1ae   : > { %v1814_v44 = vadd.f32 %v2970_v42, %v1726_v35 }
 0x1b1   : > { %v2971_v46 = vpop.f32.mrb[32].mxu1 }
 0x1b2   : > { %v2972_v47 = vpop.f32.mrb[33].mxu1 }
 0x1b3   : > { %v2973_v52 = vadd.f32 %v2972_v47, %v2971_v46  ;;  %v2974_v50 = vpop.f32.mrb[34].mxu1 }
 0x1b4   : > { %v2975_v55 = vpop.f32.mrb[35].mxu1 }
 0x1b5   : > { %v1819_v25 = vadd.f32 %v2973_v52, %v1731_v45  ;;  %v2976_v57 = vadd.f32 %v2975_v55, %v2974_v50 }
 0x1b7   : > { %v4326_v54 = vadd.f32 %v2976_v57, %v1734_v51 }
 0x1b9   : > { %v2977_v59 = vpop.f32.mrb[36].mxu1 }
 0x1ba   : > { %v2978_v53 = vpop.f32.mrb[37].mxu1 }
 0x1bb   : > { %v2979_v63 = vadd.f32 %v2978_v53, %v2977_v59  ;;  %v2980_v1 = vpop.f32.mrb[38].mxu1 }
 0x1bc   : > { %v2981_v33 = vpop.f32.mrb[39].mxu1 }
 0x1bd   : > { %v4330_v2 = vadd.f32 %v2979_v63, %v1739_v29  ;;  %v2982_v5 = vadd.f32 %v2981_v33, %v2980_v1 }
 0x1bf   : > { %v4332_v36 = vadd.f32 %v2982_v5, %v1742_v60 }
 0x1c1   : > { %v2983_v7 = vpop.f32.mrb[40].mxu1 }
 0x1c2   : > { %v2984_v8 = vpop.f32.mrb[41].mxu1 }
 0x1c3   : > { %v2985_v17 = vadd.f32 %v2984_v8, %v2983_v7  ;;  %v2986_v40 = vpop.f32.mrb[42].mxu1 }
 0x1c4   : > { %v2987_v12 = vpop.f32.mrb[43].mxu1 }
 0x1c5   : > { %v4336_v20 = vadd.f32 %v2985_v17, %v1747_v6  ;;  %v2988_v43 = vadd.f32 %v2987_v12, %v2986_v40 }
 0x1c7   : > { %v4338_v22 = vadd.f32 %v2988_v43, %v1750_v62 }
 0x1c9   : > { %v2989_v24 = vpop.f32.mrb[44].mxu1 }
 0x1ca   : > { %v2990_v27 = vpop.f32.mrb[45].mxu1 }
 0x1cb   : > { %v2991_v14 = vadd.f32 %v2990_v27, %v2989_v24  ;;  %v2992_v26 = vpop.f32.mrb[46].mxu1 }
 0x1cc   : > { %v2993_v30 = vpop.f32.mrb[47].mxu1 }
 0x1cd   : > { %v4341_v31 = vadd.f32 %v2991_v14, %v4317_v4  ;;  %v2994_v49 = vadd.f32 %v2993_v30, %v2992_v26 }
 0x1cf   : > { %v4344_v28 = vadd.f32 %v2994_v49, %v4319_v3 }
 0x1d1   : > { %v2995_v56 = vpop.f32.mrb[48].mxu1 }
 0x1d2   : > { %v2996_v61 = vpop.f32.mrb[49].mxu1 }
 0x1d3   : > { %v2997_v34 = vadd.f32 %v2996_v61, %v2995_v56  ;;  %v2998_v35 = vpop.f32.mrb[50].mxu1 }
 0x1d4   : > { %v2999_v37 = vpop.f32.mrb[51].mxu1 }
 0x1d5   : > { %v4346_v38 = vadd.f32 %v2997_v34, %v1763_v21  ;;  %v3000_v39 = vadd.f32 %v2999_v37, %v2998_v35 }
 0x1d7   : > { %v4348_v42 = vadd.f32 %v3000_v39, %v1766_v23 }
 0x1d9   : > { %v3001_v45 = vpop.f32.mrb[52].mxu1 }
 0x1da   : > { %v3002_v46 = vpop.f32.mrb[53].mxu1 }
 0x1db   : > { %v3003_v47 = vadd.f32 %v3002_v46, %v3001_v45  ;;  %v3004_v51 = vpop.f32.mrb[54].mxu1 }
 0x1dc   : > { %v3005_v4 = vpop.f32.mrb[55].mxu1 }
 0x1dd   : > { %v4350_v52 = vadd.f32 %v3003_v47, %v1771_v32 }
 0x1e1   : > { %v3023_v50 = vpop.f32.mrb[56].mxu1 }
 0x1e2   : > { %v3024_v3 = vpop.f32.mrb[57].mxu1 }
 0x1e3   : > { %v3025_v55 = vadd.f32 %v3024_v3, %v3023_v50  ;;  %v3026_v57 = vpop.f32.mrb[58].mxu1 }
 0x1e4   : > { %v3027_v29 = vpop.f32.mrb[59].mxu1 }
 0x1e5   : > { %v1899_v59 = vadd.f32 %v3025_v55, %v1811_v41  ;;  %v3028_v53 = vadd.f32 %v3027_v29, %v3026_v57 }
 0x1e7   : > { %v1902_v60 = vadd.f32 %v3028_v53, %v1814_v44  ;;  %v1954_v21 = vmax.f32 %v1899_v59, 0.0 }
 0x1e9   : > { %v1957_v63 = vmax.f32 %v1902_v60, 0.0  ;;  %v3029_v1 = vpop.f32.mrb[60].mxu1 }
 0x1ea   : > { %v3030_v23 = vpop.f32.mrb[61].mxu1 }
 0x1eb   : > { %v1993_v33 = vpack.c.bf16 %v1957_v63, %v1954_v21  ;;  %v3031_v5 = vadd.f32 %v3030_v23, %v3029_v1  ;;  %v3032_v6 = vpop.f32.mrb[62].mxu1  ;;  %v604_v21 = vsub.s32 0, %v4304_v48  ;;  %v608_v63 = vsub.s32 1, %v4304_v48 }
 0x1ec   : > { %v3033_v7 = vpop.f32.mrb[63].mxu1 }
 0x1ed   : > { %v1907_v8 = vadd.f32 %v3031_v5, %v1819_v25  ;;  %v3034_v62 = vadd.f32 %v3033_v7, %v3032_v6  ;;  %3155 = vmatmul.mubr.bf16.vlgmr.msra.gmra.mrb[28].mxu0 %v1993_v33  ;;  %v4371_v7 = vrot.slane %v4314_v58, %v604_v21 }
 0x1ee   : > { %3158 = vmatprep.mubr.msk.bf16.mxu0 %vm3830_vm0, %v3829_v10 }
 0x1ef   : > { %v1910_v32 = vadd.f32 %v3034_v62, %v4326_v54  ;;  %v1960_v17 = vmax.f32 %v1907_v8, 0.0 }
 0x1f1   : > { %v1963_v41 = vmax.f32 %v1910_v32, 0.0  ;;  %v3035_v40 = vpop.f32.mrb[64].mxu1 }
 0x1f2   : > { %v3036_v44 = vpop.f32.mrb[65].mxu1 }
 0x1f3   : > { %v3037_v12 = vadd.f32 %v3036_v44, %v3035_v40  ;;  %v3038_v43 = vpop.f32.mrb[66].mxu1  ;;  %v1996_v24 = vpack.c.bf16 %v1963_v41, %v1960_v17 }
 0x1f4   : > { %v3039_v27 = vpop.f32.mrb[67].mxu1 }
 0x1f5   : > { %v1915_v14 = vadd.f32 %v3037_v12, %v4330_v2  ;;  %v3040_v26 = vadd.f32 %v3039_v27, %v3038_v43  ;;  %3159 = vmatmul.mubr.bf16.gmra.mrb[32].mxu0 %v1996_v24 }
 0x1f6   : > { %3162 = vmatprep.mubr.msk.bf16.mxu0 %vm3830_vm0, %v3829_v10 }
 0x1f7   : > { %v1918_v25 = vadd.f32 %v3040_v26, %v4332_v36  ;;  %v1966_v30 = vmax.f32 %v1915_v14, 0.0 }
 0x1f9   : > { %v1969_v49 = vmax.f32 %v1918_v25, 0.0  ;;  %v3041_v54 = vpop.f32.mrb[68].mxu1 }
 0x1fa   : > { %v3042_v56 = vpop.f32.mrb[69].mxu1 }
 0x1fb   : > { %v3043_v61 = vadd.f32 %v3042_v56, %v3041_v54  ;;  %v3044_v34 = vpop.f32.mrb[70].mxu1  ;;  %v1999_v35 = vpack.c.bf16 %v1969_v49, %v1966_v30 }
 0x1fc   : > { %v3045_v37 = vpop.f32.mrb[71].mxu1 }
 0x1fd   : > { %v1923_v39 = vadd.f32 %v3043_v61, %v4336_v20  ;;  %v3046_v45 = vadd.f32 %v3045_v37, %v3044_v34  ;;  %3163 = vmatmul.mubr.bf16.gmra.mrb[36].mxu0 %v1999_v35 }
 0x1fe   : > { %3166 = vmatprep.mubr.msk.bf16.mxu0 %vm3830_vm0, %v3829_v10 }
 0x1ff   : > { %v1926_v2 = vadd.f32 %v3046_v45, %v4338_v22  ;;  %v1972_v46 = vmax.f32 %v1923_v39, 0.0 }
 0x201   : > { %v1975_v47 = vmax.f32 %v1926_v2, 0.0  ;;  %v3047_v36 = vpop.f32.mrb[72].mxu1 }
 0x202   : > { %v3048_v51 = vpop.f32.mrb[73].mxu1 }
 0x203   : > { %v3049_v4 = vadd.f32 %v3048_v51, %v3047_v36  ;;  %v3050_v50 = vpop.f32.mrb[74].mxu1  ;;  %v2002_v3 = vpack.c.bf16 %v1975_v47, %v1972_v46 }
 0x204   : > { %v3051_v55 = vpop.f32.mrb[75].mxu1 }
 0x205   : > { %v1931_v57 = vadd.f32 %v3049_v4, %v4341_v31  ;;  %v3052_v29 = vadd.f32 %v3051_v55, %v3050_v50  ;;  %3167 = vmatmul.mubr.bf16.gmra.mrb[40].mxu0 %v2002_v3 }
 0x207   : > { %v1934_v20 = vadd.f32 %v3052_v29, %v4344_v28  ;;  %v1978_v59 = vmax.f32 %v1931_v57, 0.0  ;;  %v4374_v28 = vrot.slane %v4314_v58, %v608_v63 }
 0x209   : > { %v1981_v53 = vmax.f32 %v1934_v20, 0.0  ;;  %v3053_v60 = vpop.f32.mrb[76].mxu1 }
 0x20a   : > { %v3054_v22 = vpop.f32.mrb[77].mxu1 }
 0x20b   : > { %v4367_v1 = vpack.c.bf16 %v1981_v53, %v1978_v59  ;;  %v3055_v23 = vadd.f32 %v3054_v22, %v3053_v60  ;;  %v3056_v33 = vpop.f32.mrb[78].mxu1 }
 0x20c   : > { %v3057_v5 = vpop.f32.mrb[79].mxu1 }
 0x20d   : > { %v1939_v6 = vadd.f32 %v3055_v23, %v4346_v38  ;;  %v3058_v31 = vadd.f32 %v3057_v5, %v3056_v33 }
 0x20f   : > { %v1942_v8 = vadd.f32 %v3058_v31, %v4348_v42  ;;  %v1984_v32 = vmax.f32 %v1939_v6, 0.0 }
 0x210   : > { %v1621_v62 = vpop.f32.mrb[0].mxu0 }
 0x211   : > { %v1987_v17 = vmax.f32 %v1942_v8, 0.0  ;;  %v3198_v48 = vadd.f32 %v1621_v62, %v4371_v7  ;;  %v3059_v41 = vpop.f32.mrb[80].mxu1  ;;  %v1623_v40 = vpop.f32.mrb[1].mxu0 }
 0x212   : > { %v3199_v44 = vadd.f32 %v1623_v40, %v4374_v28  ;;  %v3060_v12 = vpop.f32.mrb[81].mxu1  ;;  %v1625_v38 = vpop.f32.mrb[2].mxu0 }
 0x213   : > { %v3061_v43 = vadd.f32 %v3060_v12, %v3059_v41  ;;  %v3200_v24 = vadd.f32 %v1625_v38, %v4371_v7  ;;  %v1627_v27 = vpop.f32.mrb[3].mxu0  ;;  %v3062_v14 = vpop.f32.mrb[82].mxu1  ;;  %v4380_v58 = vpack.c.bf16 %v1987_v17, %v1984_v32  ;;  %v1952_v25 = vmax.f32 %v3198_v48, 0.0 }
 0x214   : > { %v3201_v42 = vadd.f32 %v1627_v27, %v4374_v28  ;;  %v3063_v26 = vpop.f32.mrb[83].mxu1  ;;  %v1953_v54 = vmax.f32 %v3199_v44, 0.0 }
 0x215   : > { %v4384_v30 = vadd.f32 %v3061_v43, %v4350_v52  ;;  %v1955_v49 = vmax.f32 %v3200_v24, 0.0 }
 0x216   : > { %v1956_v56 = vmax.f32 %v3201_v42, 0.0 }
 0x217   : > { %v1991_v61 = vpack.c.bf16 %v1955_v49, %v1952_v25 }
 0x218   : > { %v1992_v34 = vpack.c.bf16 %v1956_v56, %v1953_v54  ;;  %v1631_v35 = vpop.f32.mrb[4].mxu0 }
 0x219   : > { %v3202_v37 = vadd.f32 %v1631_v35, %v4371_v7  ;;  %v1633_v39 = vpop.f32.mrb[5].mxu0 }
 0x21a   : > { %v3203_v45 = vadd.f32 %v1633_v39, %v4374_v28  ;;  %v1635_v2 = vpop.f32.mrb[6].mxu0  ;;  %2243 = vmatprep.mubr.bf16.mxu1 %v1992_v34 }
 0x21b   : > { %v3204_v46 = vadd.f32 %v1635_v2, %v4371_v7  ;;  %v1637_v47 = vpop.f32.mrb[7].mxu0  ;;  %2244 = vmatmul.mubr.bf16.vlgmr.msra.gmra.mrb[84].mxu1 %v1991_v61  ;;  %v1958_v36 = vmax.f32 %v3202_v37, 0.0 }
 0x21c   : > { %v3205_v52 = vadd.f32 %v1637_v47, %v4374_v28  ;;  %3190 = vmatpush3.bf16.msra.mxu1 %v4252_v9  ;;  %v1959_v4 = vmax.f32 %v3203_v45, 0.0 }
 0x21d   : > { %v1961_v51 = vmax.f32 %v3204_v46, 0.0  ;;  %3183 = vmatprep.subr.bf16.mxu1 %v3829_v10 }
 0x21e   : > { %v1962_v50 = vmax.f32 %v3205_v52, 0.0 }
 0x21f   : > { %v1994_v3 = vpack.c.bf16 %v1961_v51, %v1958_v36 }
 0x220   : > { %v1995_v55 = vpack.c.bf16 %v1962_v50, %v1959_v4  ;;  %v1641_v57 = vpop.f32.mrb[8].mxu0  ;;  %3191 = vmatpush3.bf16.msra.mxu1 %v4259_v11 }
 0x221   : > { %v3206_v29 = vadd.f32 %v1641_v57, %v4371_v7  ;;  %v1643_v20 = vpop.f32.mrb[9].mxu0  ;;  %3184 = vmatprep.subr.bf16.mxu1 %v3829_v10 }
 0x222   : > { %v3207_v59 = vadd.f32 %v1643_v20, %v4374_v28  ;;  %v1645_v53 = vpop.f32.mrb[10].mxu0  ;;  %2251 = vmatprep.mubr.bf16.mxu1 %v1995_v55 }
 0x223   : > { %v3208_v9 = vadd.f32 %v1645_v53, %v4371_v7  ;;  %v1647_v60 = vpop.f32.mrb[11].mxu0  ;;  %2252 = vmatmul.mubr.bf16.gmra.mrb[88].mxu1 %v1994_v3  ;;  %v1964_v22 = vmax.f32 %v3206_v29, 0.0 }
 0x224   : > { %v3209_v21 = vadd.f32 %v1647_v60, %v4374_v28  ;;  %3192 = vmatpush3.bf16.msra.mxu1 %v4264_v13  ;;  %v1965_v11 = vmax.f32 %v3207_v59, 0.0 }
 0x225   : > { %v1967_v63 = vmax.f32 %v3208_v9, 0.0  ;;  %3185 = vmatprep.subr.bf16.mxu1 %v3829_v10 }
 0x226   : > { %v1968_v23 = vmax.f32 %v3209_v21, 0.0 }
 0x227   : > { %v1997_v33 = vpack.c.bf16 %v1967_v63, %v1964_v22 }
 0x228   : > { %v1998_v5 = vpack.c.bf16 %v1968_v23, %v1965_v11  ;;  %v1651_v6 = vpop.f32.mrb[12].mxu0  ;;  %3193 = vmatpush3.bf16.msra.mxu1 %v4270_v15 }
 0x229   : > { %v3210_v31 = vadd.f32 %v1651_v6, %v4371_v7  ;;  %v1653_v8 = vpop.f32.mrb[13].mxu0  ;;  %3186 = vmatprep.subr.bf16.mxu1 %v3829_v10 }
 0x22a   : > { %v3211_v62 = vadd.f32 %v1653_v8, %v4374_v28  ;;  %v1655_v32 = vpop.f32.mrb[14].mxu0  ;;  %2259 = vmatprep.mubr.bf16.mxu1 %v1998_v5 }
 0x22b   : > { %v3212_v13 = vadd.f32 %v1655_v32, %v4371_v7  ;;  %v1657_v17 = vpop.f32.mrb[15].mxu0  ;;  %2260 = vmatmul.mubr.bf16.gmra.mrb[92].mxu1 %v1997_v33  ;;  %v1970_v41 = vmax.f32 %v3210_v31, 0.0 }
 0x22c   : > { %v3213_v48 = vadd.f32 %v1657_v17, %v4374_v28  ;;  %3194 = vmatpush3.bf16.msra.mxu1 %v4275_v16  ;;  %v1971_v15 = vmax.f32 %v3211_v62, 0.0 }
 0x22d   : > { %v1973_v40 = vmax.f32 %v3212_v13, 0.0  ;;  %3187 = vmatprep.subr.bf16.mxu1 %v3829_v10 }
 0x22e   : > { %v1974_v44 = vmax.f32 %v3213_v48, 0.0  ;;  %v4436_v48 = vld [vmem:[%s4575_s4] ss:$0 sm:$0xff] }
 0x22f   : > { %v2000_v12 = vpack.c.bf16 %v1973_v40, %v1970_v41 }
 0x230   : > { %v2001_v38 = vpack.c.bf16 %v1974_v44, %v1971_v15  ;;  %v1661_v43 = vpop.f32.mrb[16].mxu0  ;;  %3195 = vmatpush3.bf16.msra.mxu1 %v4279_v0 }
 0x231   : > { %v3214_v24 = vadd.f32 %v1661_v43, %v4371_v7  ;;  %v1663_v27 = vpop.f32.mrb[17].mxu0  ;;  %3188 = vmatprep.subr.bf16.mxu1 %v3829_v10 }
 0x232   : > { %v3215_v14 = vadd.f32 %v1663_v27, %v4374_v28  ;;  %v1665_v42 = vpop.f32.mrb[18].mxu0  ;;  %2267 = vmatprep.mubr.bf16.mxu1 %v2001_v38 }
 0x233   : > { %v3216_v16 = vadd.f32 %v1665_v42, %v4371_v7  ;;  %v1667_v26 = vpop.f32.mrb[19].mxu0  ;;  %2268 = vmatmul.mubr.bf16.gmra.mrb[96].mxu1 %v2000_v12  ;;  %v1976_v49 = vmax.f32 %v3214_v24, 0.0 }
 0x234   : > { %v3217_v25 = vadd.f32 %v1667_v26, %v4374_v28  ;;  %3196 = vmatpush3.bf16.msra.mxu1 %v4283_v18  ;;  %v1977_v0 = vmax.f32 %v3215_v14, 0.0 }
 0x235   : > { %v1979_v54 = vmax.f32 %v3216_v16, 0.0  ;;  %3189 = vmatprep.subr.bf16.mxu1 %v3829_v10 }
 0x236   : > { %v1980_v56 = vmax.f32 %v3217_v25, 0.0 }
 0x237   : > { %v2003_v61 = vpack.c.bf16 %v1979_v54, %v1976_v49 }
 0x238   : > { %v2004_v34 = vpack.c.bf16 %v1980_v56, %v1977_v0  ;;  %v1671_v35 = vpop.f32.mrb[20].mxu0  ;;  %3197 = vmatpush3.bf16.msra.mxu1 %v4287_v19 }
 0x239   : > { %v3218_v37 = vadd.f32 %v1671_v35, %v4371_v7  ;;  %v1673_v39 = vpop.f32.mrb[21].mxu0 }
 0x23a   : > { %v3219_v45 = vadd.f32 %v1673_v39, %v4374_v28  ;;  %v1675_v2 = vpop.f32.mrb[22].mxu0  ;;  %2275 = vmatprep.mubr.bf16.mxu1 %v2004_v34 }
 0x23b   : > { %v3220_v18 = vadd.f32 %v1675_v2, %v4371_v7  ;;  %v1677_v46 = vpop.f32.mrb[23].mxu0  ;;  %2276 = vmatmul.mubr.bf16.gmra.mrb[100].mxu1 %v2003_v61  ;;  %v1982_v52 = vmax.f32 %v3218_v37, 0.0 }
 0x23c   : > { %v3221_v47 = vadd.f32 %v1677_v46, %v4374_v28  ;;  %v1983_v51 = vmax.f32 %v3219_v45, 0.0 }
 0x23d   : > { %v1985_v36 = vmax.f32 %v3220_v18, 0.0 }
 0x23e   : > { %v1986_v4 = vmax.f32 %v3221_v47, 0.0 }
 0x23f   : > { %v2006_v50 = vpack.c.bf16 %v1985_v36, %v1982_v52 }
 0x240   : > { %v2007_v3 = vpack.c.bf16 %v1986_v4, %v1983_v51  ;;  %v1681_v19 = vpop.f32.mrb[24].mxu0 }
 0x241   : > { %v3222_v55 = vadd.f32 %v1681_v19, %v4371_v7  ;;  %v1683_v57 = vpop.f32.mrb[25].mxu0  ;;  %v1990_v7 = vmax.f32 %v4384_v30, 0.0 }
 0x242   : > { %v3223_v29 = vadd.f32 %v1683_v57, %v4374_v28  ;;  %v1685_v20 = vpop.f32.mrb[26].mxu0  ;;  %2283 = vmatprep.mubr.bf16.mxu1 %v2007_v3 }
 0x243   : > { %v1686_v59 = vpop.f32.mrb[27].mxu0  ;;  %2284 = vmatmul.mubr.bf16.gmra.mrb[104].mxu1 %v2006_v50  ;;  %v1988_v9 = vmax.f32 %v3222_v55, 0.0  ;;  %v2011_v28 = vpack.c.bf16 %v1990_v7, %v1990_v7 }
 0x244   : > { %v1989_v53 = vmax.f32 %v3223_v29, 0.0 }
 0x245   : > { %v2009_v21 = vpack.c.bf16 %v1988_v9, %v1988_v9 }
 0x246   : > { %v2010_v60 = vpack.c.bf16 %v1989_v53, %v1989_v53 }
 0x248   : > { %2291 = vmatprep.mubr.bf16.mxu1 %v2010_v60 }
 0x24b   : > { %2292 = vmatmul.mubr.bf16.gmra.mrb[108].mxu1 %v2009_v21 }
 0x24c   : > { %3170 = vmatprep.mubr.msk.bf16.mxu1 %vm3830_vm0, %v3829_v10 }
 0x253   : > { %3171 = vmatmul.mubr.bf16.vlgmr.msra.gmra.mrb[112].mxu1 %v4367_v1 }
 0x254   : > { %3174 = vmatprep.mubr.msk.bf16.mxu1 %vm3830_vm0, %v3829_v10 }
 0x25b   : > { %3175 = vmatmul.mubr.bf16.gmra.mrb[116].mxu1 %v4380_v58 }
 0x25c   : > { %3178 = vmatprep.mubr.msk.bf16.mxu1 %vm3830_vm0, %v3829_v10 }
 0x263   : > { %3179 = vmatmul.mubr.bf16.gmra.mrb[120].mxu1 %v2011_v28 }
 0x2c0   : > { %v2333_v22 = vpop.f32.mrb[28].mxu0 }
 0x2c1   : > { %v3156_v63 = vpop.f32.mrb[29].mxu0 }
 0x2c2   : > { %v2336_v11 = vpop.f32.mrb[30].mxu0 }
 0x2c3   : > { %v3157_v23 = vpop.f32.mrb[31].mxu0 }
 0x2c8   : > { %v2341_v33 = vpop.f32.mrb[32].mxu0 }
 0x2c9   : > { %v3160_v5 = vpop.f32.mrb[33].mxu0 }
 0x2ca   : > { %v2344_v1 = vpop.f32.mrb[34].mxu0 }
 0x2cb   : > { %v3161_v6 = vpop.f32.mrb[35].mxu0 }
 0x2d0   : > { %v2349_v31 = vpop.f32.mrb[36].mxu0 }
 0x2d1   : > { %v3164_v8 = vpop.f32.mrb[37].mxu0 }
 0x2d2   : > { %v2352_v62 = vpop.f32.mrb[38].mxu0 }
 0x2d3   : > { %v3165_v58 = vpop.f32.mrb[39].mxu0 }
 0x2d8   : > { %v2357_v32 = vpop.f32.mrb[40].mxu0 }
 0x2d9   : > { %v3168_v13 = vpop.f32.mrb[41].mxu0 }
 0x2da   : > { %v2360_v10 = vpop.f32.mrb[42].mxu0 }
 0x2db   : > { %v3169_v17 = vpop.f32.mrb[43].mxu0 }
 0x2ee   : > { %v3081_v30 = vpop.f32.mrb[84].mxu1 }
 0x2ef   : > { %v3082_v41 = vpop.f32.mrb[85].mxu1 }
 0x2f0   : > { %v3083_v40 = vadd.f32 %v3082_v41, %v3081_v30  ;;  %v3084_v15 = vpop.f32.mrb[86].mxu1 }
 0x2f1   : > { %v3085_v44 = vpop.f32.mrb[87].mxu1 }
 0x2f2   : > { %v2246_v12 = vadd.f32 %v3083_v40, %v4436_v48  ;;  %v3086_v38 = vadd.f32 %v3085_v44, %v3084_v15 }
 0x2f4   : > { %v2334_v43 = vadd.f32 %v2333_v22, %v2246_v12  ;;  %v2249_v24 = vadd.f32 %v3086_v38, %v4436_v48 }
 0x2f6   : > { %2388 = vst.msk [vmem:[%s4440_s18] sm:$0xff] %vm2387_vm1, %v2334_v43  ;;  %v2337_v27 = vadd.f32 %v2336_v11, %v2249_v24  ;;  %v3087_v14 = vpop.f32.mrb[88].mxu1 }
 0x2f7   : > { %v3088_v42 = vpop.f32.mrb[89].mxu1 }
 0x2f8   : > { %2389 = vst.msk [vmem:[%s4440_s18 + $0x8] sm:$0xff] %vm2387_vm1, %v2337_v27  ;;  %v3089_v16 = vadd.f32 %v3088_v42, %v3087_v14  ;;  %v3090_v26 = vpop.f32.mrb[90].mxu1 }
 0x2f9   : > { %v3091_v25 = vpop.f32.mrb[91].mxu1 }
 0x2fa   : > { %v2254_v49 = vadd.f32 %v3089_v16, %v4436_v48  ;;  %v3092_v54 = vadd.f32 %v3091_v25, %v3090_v26 }
 0x2fc   : > { %v2342_v0 = vadd.f32 %v2341_v33, %v2254_v49  ;;  %v2257_v56 = vadd.f32 %v3092_v54, %v4436_v48 }
 0x2fe   : > { %2390 = vst.msk [vmem:[%s4440_s18 + $0x10] sm:$0xff] %vm2387_vm1, %v2342_v0  ;;  %v2345_v61 = vadd.f32 %v2344_v1, %v2257_v56  ;;  %v3093_v34 = vpop.f32.mrb[92].mxu1 }
 0x2ff   : > { %v3094_v35 = vpop.f32.mrb[93].mxu1 }
 0x300   : > { %2391 = vst.msk [vmem:[%s4440_s18 + $0x18] sm:$0xff] %vm2387_vm1, %v2345_v61  ;;  %v3095_v37 = vadd.f32 %v3094_v35, %v3093_v34  ;;  %v3096_v39 = vpop.f32.mrb[94].mxu1 }
 0x301   : > { %v3097_v45 = vpop.f32.mrb[95].mxu1 }
 0x302   : > { %v2262_v2 = vadd.f32 %v3095_v37, %v4436_v48  ;;  %v3098_v18 = vadd.f32 %v3097_v45, %v3096_v39 }
 0x304   : > { %v2350_v46 = vadd.f32 %v2349_v31, %v2262_v2  ;;  %v2265_v47 = vadd.f32 %v3098_v18, %v4436_v48 }
 0x306   : > { %2392 = vst.msk [vmem:[%s4440_s18 + $0x20] sm:$0xff] %vm2387_vm1, %v2350_v46  ;;  %v2353_v52 = vadd.f32 %v2352_v62, %v2265_v47  ;;  %v3099_v36 = vpop.f32.mrb[96].mxu1 }
 0x307   : > { %v3100_v51 = vpop.f32.mrb[97].mxu1 }
 0x308   : > { %2393 = vst.msk [vmem:[%s4440_s18 + $0x28] sm:$0xff] %vm2387_vm1, %v2353_v52  ;;  %v3101_v4 = vadd.f32 %v3100_v51, %v3099_v36  ;;  %v3102_v50 = vpop.f32.mrb[98].mxu1 }
 0x309   : > { %v3103_v3 = vpop.f32.mrb[99].mxu1 }
 0x30a   : > { %v2270_v19 = vadd.f32 %v3101_v4, %v4436_v48  ;;  %v3104_v55 = vadd.f32 %v3103_v3, %v3102_v50 }
 0x30c   : > { %v2358_v57 = vadd.f32 %v2357_v32, %v2270_v19  ;;  %v2273_v29 = vadd.f32 %v3104_v55, %v4436_v48 }
 0x30e   : > { %2394 = vst.msk [vmem:[%s4440_s18 + $0x30] sm:$0xff] %vm2387_vm1, %v2358_v57  ;;  %v2361_v20 = vadd.f32 %v2360_v10, %v2273_v29  ;;  %v3105_v59 = vpop.f32.mrb[100].mxu1 }
 0x30f   : > { %v3106_v53 = vpop.f32.mrb[101].mxu1 }
 0x310   : > { %2395 = vst.msk [vmem:[%s4440_s18 + $0x38] sm:$0xff] %vm2387_vm1, %v2361_v20  ;;  %v3107_v9 = vadd.f32 %v3106_v53, %v3105_v59  ;;  %v3108_v60 = vpop.f32.mrb[102].mxu1 }
 0x311   : > { %v3109_v21 = vpop.f32.mrb[103].mxu1 }
 0x312   : > { %v3110_v7 = vadd.f32 %v3109_v21, %v3108_v60  ;;  %v2278_v58 = vadd.f32 %v3107_v9, %v4436_v48 }
 0x314   : > { %v2281_v17 = vadd.f32 %v3110_v7, %v4436_v48 }
 0x316   : > { %v3111_v28 = vpop.f32.mrb[104].mxu1 }
 0x317   : > { %v3112_v22 = vpop.f32.mrb[105].mxu1 }
 0x318   : > { %v3113_v63 = vadd.f32 %v3112_v22, %v3111_v28  ;;  %v3114_v11 = vpop.f32.mrb[106].mxu1 }
 0x319   : > { %v3115_v23 = vpop.f32.mrb[107].mxu1 }
 0x31a   : > { %v3116_v33 = vadd.f32 %v3115_v23, %v3114_v11  ;;  %v2286_v15 = vadd.f32 %v3113_v63, %v4436_v48 }
 0x31c   : > { %v2289_v43 = vadd.f32 %v3116_v33, %v4436_v48 }
 0x31e   : > { %v3117_v5 = vpop.f32.mrb[108].mxu1 }
 0x31f   : > { %v3118_v1 = vpop.f32.mrb[109].mxu1 }
 0x320   : > { %v3119_v6 = vadd.f32 %v3118_v1, %v3117_v5  ;;  %v3120_v31 = vpop.f32.mrb[110].mxu1 }
 0x321   : > { %v3121_v8 = vpop.f32.mrb[111].mxu1 }
 0x322   : > { %v2294_v62 = vadd.f32 %v3119_v6, %v4436_v48 }
 0x326   : > { %v2365_v32 = vpop.f32.mrb[112].mxu1 }
 0x327   : > { %v2366_v13 = vadd.f32 %v2365_v32, %v2278_v58  ;;  %v3172_v10 = vpop.f32.mrb[113].mxu1 }
 0x328   : > { %v2368_v30 = vpop.f32.mrb[114].mxu1 }
 0x329   : > { %2396 = vst.msk [vmem:[%s4440_s18 + $0x40] sm:$0xff] %vm2387_vm1, %v2366_v13  ;;  %v2369_v41 = vadd.f32 %v2368_v30, %v2281_v17  ;;  %v3173_v40 = vpop.f32.mrb[115].mxu1 }
 0x32b   : > { %2397 = vst.msk [vmem:[%s4440_s18 + $0x48] sm:$0xff] %vm2387_vm1, %v2369_v41 }
 0x32e   : > { %v2373_v44 = vpop.f32.mrb[116].mxu1 }
 0x32f   : > { %v2374_v12 = vadd.f32 %v2373_v44, %v2286_v15  ;;  %v3176_v38 = vpop.f32.mrb[117].mxu1 }
 0x330   : > { %v2376_v24 = vpop.f32.mrb[118].mxu1 }
 0x331   : > { %2398 = vst.msk [vmem:[%s4440_s18 + $0x50] sm:$0xff] %vm2387_vm1, %v2374_v12  ;;  %v2377_v27 = vadd.f32 %v2376_v24, %v2289_v43  ;;  %v3177_v14 = vpop.f32.mrb[119].mxu1 }
 0x333   : > { %2399 = vst.msk [vmem:[%s4440_s18 + $0x58] sm:$0xff] %vm2387_vm1, %v2377_v27  ;;  %2407 = sbr.rel (!%p4590_p6) target bundleno = 887 (0x377), region = 56 }
 0x336   : > { %v2381_v42 = vpop.f32.mrb[120].mxu1 }
 0x337   : > { %v2382_v16 = vadd.f32 %v2381_v42, %v2294_v62  ;;  %v3180_v26 = vpop.f32.mrb[121].mxu1 }
 0x338   : > { %v2384_v25 = vpop.f32.mrb[122].mxu1 }
 0x339   : > { %2400 = vst.msk [vmem:[%s4440_s18 + $0x60] sm:$0xff] %vm2387_vm1, %v2382_v16  ;;  %v3181_v49 = vpop.f32.mrb[123].mxu1 }
 0x33a   : > { %s4601_s11 = smov (!%p2410_p7, %s2409_s11), 13 }
 0x33b   : > { %s2878_s10 = sshll.u32 %s4601_s11, 7 }
 0x33c   : > { %p2881_p9 = scmp.eq.s32.totalorder %s2878_s10, 0 }
 0x33d   : > { %3628 = sdivrem.u32 (!%p2881_p9), %s4601_s11, 13 }
 0x33e   : > { %2418 = sbr.rel (%p2881_p9) target bundleno = 887 (0x377), region = 60 }
 0x346   : > { %s4492_s29 = spop.drf %3628 }
 0x347   : > { %p2882_p12 = scmp.le.s32.totalorder %s4492_s29, 0 }
 0x348   : > { %s4591_s22 = smov (!%p2882_p12), %s4486_s8  ;;  %s4592_s27 = smov (!%p2882_p12), %s4440_s18 }
 0x349   : > { %2631 = sbr.rel (%p2882_p12) target bundleno = 858 (0x35a), region = 142  ;;  %s4501_s17 = smov (!%p2882_p12), 0  }
 0x34a   : > { %s4503_s7 = smov (!%p2882_p12), 0  }
 0x350 LB: >> { %v2506_v48 = vld [vmem:[%s3794_s27] sm:$0xff]  ;;  %v2508_v54 = vld [vmem:[%s3794_s27 + $0x8] sm:$0xff]  ;;  %v2510_v0 = vld [vmem:[%s3794_s27 + $0x10] sm:$0xff]  ;;  %s2532_s24 = sadd.s32 1, %s3798_s17  ;;  %s2500_s7 = sadd.s32 1, %s3802_s7   ;;  %s3802_s7 = sphi %s4503_s7, %s2500_s7   ;;  %s3798_s17 = sphi %s4501_s17, %s4593_s17   ;;  %s3794_s27 = sphi %s4592_s27, %s2537_s27   ;;  %s3790_s22 = sphi %s4591_s22, %s2538_s22  }
 0x351   : >> { %2507 = vst [vmem:[%s3790_s22] sm:$0xff] %v2506_v48  ;;  %2509 = vst [vmem:[%s3790_s22 + $0x8] sm:$0xff] %v2508_v54  ;;  %v2512_v56 = vld [vmem:[%s3794_s27 + $0x18] sm:$0xff]  ;;  %v2514_v61 = vld [vmem:[%s3794_s27 + $0x20] sm:$0xff]  ;;  %p2533_p0 = scmp.ge.s32.totalorder %s2532_s24, %s4492_s29  ;;  %p2499_p1 = scmp.ge.s32.totalorder %s2500_s7, %s4492_s29 }
 0x352   : >> { %2511 = vst [vmem:[%s3790_s22 + $0x10] sm:$0xff] %v2510_v0  ;;  %v2516_v34 = vld [vmem:[%s3794_s27 + $0x28] sm:$0xff]  ;;  %2513 = vst [vmem:[%s3790_s22 + $0x18] sm:$0xff] %v2512_v56  ;;  %v2518_v35 = vld [vmem:[%s3794_s27 + $0x30] sm:$0xff] }
 0x353   : >> { %2515 = vst [vmem:[%s3790_s22 + $0x20] sm:$0xff] %v2514_v61  ;;  %2517 = vst [vmem:[%s3790_s22 + $0x28] sm:$0xff] %v2516_v34  ;;  %v2520_v37 = vld [vmem:[%s3794_s27 + $0x38] sm:$0xff]  ;;  %v2522_v39 = vld [vmem:[%s3794_s27 + $0x40] sm:$0xff]  ;;  %s4603_s24 = smov (%p2533_p0, %s2532_s24), 0  ;;  %2502 = sbr.rel (!%p2499_p1) target bundleno = 848 (0x350), region = 148 }
 0x354   : >> { %2519 = vst [vmem:[%s3790_s22 + $0x30] sm:$0xff] %v2518_v35  ;;  %2521 = vst [vmem:[%s3790_s22 + $0x38] sm:$0xff] %v2520_v37  ;;  %v2524_v45 = vld [vmem:[%s3794_s27 + $0x48] sm:$0xff]  ;;  %v2526_v2 = vld [vmem:[%s3794_s27 + $0x50] sm:$0xff]  ;;  %s2535_s25 = smul.u32 104, %s4603_s24  ;;  %s4593_s17 = smov %s4603_s24 }
 0x355   : >> { %2523 = vst [vmem:[%s3790_s22 + $0x40] sm:$0xff] %v2522_v39  ;;  %v2528_v18 = vld [vmem:[%s3794_s27 + $0x58] sm:$0xff]  ;;  %2525 = vst [vmem:[%s3790_s22 + $0x48] sm:$0xff] %v2524_v45  ;;  %v2530_v46 = vld [vmem:[%s3794_s27 + $0x60] sm:$0xff] }
 0x356   : >> { %2527 = vst [vmem:[%s3790_s22 + $0x50] sm:$0xff] %v2526_v2  ;;  %2529 = vst [vmem:[%s3790_s22 + $0x58] sm:$0xff] %v2528_v18  ;;  %s2537_s27 = scalar_lea.vmem %s4440_s18, %s2535_s25 [#allocation7]  }
 0x357   : >> { %2531 = vst [vmem:[%s3790_s22 + $0x60] sm:$0xff] %v2530_v46  ;;  %s2538_s22 = scalar_lea.vmem %s4486_s8, %s2535_s25  }
 0x35a PF: > { %3630 = sdivrem.u32 %s4601_s11, 13 }
 0x35b   : > { %s2883_s6 = smul.u32 104, %s4492_s29 }
 0x35d   : > { %s2543_s28 = scalar_lea.vmem %s4440_s18, %s2883_s6 [#allocation7]   ;;  %s2545_s30 = scalar_lea.vmem %s4486_s8, %s2883_s6  }
 0x363   : > { %s3631_s14 = spop.drf %3630 }
 0x364   : > { %p2885_p4 = scmp.le.s32.totalorder %s3631_s14, 0 }
 0x365   : > { %s3804_s15 = smov (!%p2885_p4), %s2545_s30   ;;  %s3808_s16 = smov (!%p2885_p4), %s2543_s28  }
 0x366   : > { %2645 = sbr.rel (%p2885_p4) target bundleno = 887 (0x377), region = 153  ;;  %s3812_s21 = smov (!%p2885_p4), 0  }
 0x367   : > { %s3816_s9 = smov (!%p2885_p4), 0  }
 0x36d LB: >> { %v2555_v47 = vld [vmem:[%s3810_s16] sm:$0xff]  ;;  %s2557_s12 = sadd.s32 1, %s3814_s21  ;;  %s2549_s9 = sadd.s32 1, %s3818_s9   ;;  %s3818_s9 = sphi %s3816_s9, %s2549_s9   ;;  %s3814_s21 = sphi %s3812_s21, %s3813_s21   ;;  %s3810_s16 = sphi %s3808_s16, %s2562_s16   ;;  %s3806_s15 = sphi %s3804_s15, %s2563_s15  }
 0x36e   : >> { %2556 = vst [vmem:[%s3806_s15] sm:$0xff] %v2555_v47  ;;  %p2558_p5 = scmp.ge.s32.totalorder %s2557_s12, %s3631_s14  ;;  %p2548_p8 = scmp.ge.s32.totalorder %s2549_s9, %s3631_s14 }
 0x370   : >> { %s4605_s12 = smov (%p2558_p5, %s2557_s12), 0  ;;  %2551 = sbr.rel (!%p2548_p8) target bundleno = 877 (0x36d), region = 159 }
 0x371   : >> { %s2886_s18 = sshll.u32 %s4605_s12, 3  ;;  %s3813_s21 = smov %s4605_s12  }
 0x372   : >> { %s2562_s16 = scalar_lea.vmem %s2543_s28, %s2886_s18 [#allocation7]   ;;  %s2563_s15 = scalar_lea.vmem %s2545_s30, %s2886_s18  }
 0x377 PF: > { %p16_p11 = scmp.ge.s32.totalorder %s3883_s23, 4   ;;  %s4594_s18 = smov %s3778_s19 }
 0x378   : > { %s4595_s19 = smov %s3782_s20  ;;  %s4596_s20 = smov %s3893_s26 }
 0x379   : > { %s4597_s21 = smov %s3883_s23  ;;  %18 = sbr.rel (!%p16_p11) target bundleno = 4 (0x4), region = 170 }
 0x380   :  { %2579 = vsyncpa [#allocation3], 1 }
 0x381   :  { %2581 = vsyncpa [#allocation3 + $0x1], 1 }
 0x382   :  { %2582 = vsyncpa [#allocation5], 1 }

</bundles_post_ra>
